<compile_context>
chip_gen: v7x
topology: tpu7x:2x2x1
jax: 0.10.0
libtpu: 0.0.40
codegen_flags: <defaults>
</compile_context>

<pallas_src>
import functools
import math

import jax
import jax.numpy as jnp
from jax import lax
from jax.experimental import pallas as pl
from jax.experimental.pallas import tpu as pltpu


# ------------------------------------------------------------------
# Fused kernel: stem + all encoder layers
# ------------------------------------------------------------------


def _layer_norm(h, g, b, eps):
    mu = jnp.mean(h, axis=-1, keepdims=True)
    var = jnp.mean(jnp.square(h - mu), axis=-1, keepdims=True)
    return (h - mu) * jax.lax.rsqrt(var + eps) * g + b


def _codetr_fused_kernel(patches_ref, pos_ref, stem_w_ref, stem_b_ref,
                         wqk_ref, wv_ref, wo_ref, w1_ref, w2_ref,
                         bqk_ref, b1_ref, vecs_ref,
                         o_ref, h_sc, *,
                         num_heads, head_dim, eps, mxu_dtype):
    D = num_heads * head_dim
    scale = 1.0 / math.sqrt(head_dim)
    l = pl.program_id(1)

    # ---- fused stem (patchify conv folded with 1x1 input projection), once per image ---
    @pl.when(l == 0)
    def _stem():
        h0 = jnp.dot(patches_ref[0], stem_w_ref[...],
                     preferred_element_type=jnp.float32) + stem_b_ref[...]
        h_sc[...] = h0

    x = h_sc[...]                       # (S, D) f32, resident across the layer axis
    pos = pos_ref[...]                  # (S, D) f32, shared across batch & layers

    # ---- packed per-layer vectors: rows = [b_v, b_o, ln1_g, ln1_b, b2, ln2_g, ln2_b, pad]
    vecs = vecs_ref[0]                  # (8, D) f32
    b_v, b_o = vecs[0:1], vecs[1:2]
    ln1_g, ln1_b = vecs[2:3], vecs[3:4]
    b2 = vecs[4:5]
    ln2_g, ln2_b = vecs[5:6], vecs[6:7]

    # ---- q/k/v projections (pos folded algebraically: q,k from x+pos, v from x) -------
    xp = (x + pos).astype(mxu_dtype)                                   # one VPU add
    qk = jnp.dot(xp, wqk_ref[0], preferred_element_type=jnp.float32) + bqk_ref[0]
    v = jnp.dot(x.astype(mxu_dtype), wv_ref[0],
                preferred_element_type=jnp.float32) + b_v
    q = qk[:, :D]
    k = qk[:, D:]

    # ---- multi-head attention, all heads in-kernel -------------------------------------
    # TODO(synk): for large head counts, switch to lax.fori_loop(unroll=True) over a
    # (num_heads, S, head_dim)-layout scratch instead of a full static unroll + lane slices.
    heads = []
    for hh in range(num_heads):
        sl = slice(hh * head_dim, (hh + 1) * head_dim)
        qh = (q[:, sl] * scale).astype(mxu_dtype)
        kh = k[:, sl].astype(mxu_dtype)
        vh = v[:, sl].astype(mxu_dtype)
        # contraction on the last dim of both operands -> no materialized transpose
        s = lax.dot_general(qh, kh, (((1,), (1,)), ((), ())),
                            preferred_element_type=jnp.float32)        # (S, S)
        m = jnp.max(s, axis=-1, keepdims=True)
        p = jnp.exp(s - m)                                             # f32 softmax math
        p = p * pl.reciprocal(jnp.sum(p, axis=-1, keepdims=True), approx=True)
        heads.append(jnp.dot(p.astype(mxu_dtype), vh,
                             preferred_element_type=jnp.float32))      # (S, Dh)
    attn_cat = jnp.concatenate(heads, axis=-1)                         # (S, D) f32
    # single output projection with full K = D (instead of num_heads K=head_dim matmuls)
    attn = jnp.dot(attn_cat.astype(mxu_dtype), wo_ref[0],
                   preferred_element_type=jnp.float32) + b_o

    # ---- residual + post-LN -------------------------------------------------------------
    h1 = _layer_norm(x + attn, ln1_g, ln1_b, eps)

    # ---- FFN (relu on the f32 accumulator, fully VMEM resident) --------------------------
    f = jnp.dot(h1.astype(mxu_dtype), w1_ref[0],
                preferred_element_type=jnp.float32) + b1_ref[0]
    f = jnp.maximum(f, 0.0)
    f2 = jnp.dot(f.astype(mxu_dtype), w2_ref[0],
                 preferred_element_type=jnp.float32) + b2

    h2 = _layer_norm(h1 + f2, ln2_g, ln2_b, eps)
    h_sc[...] = h2                                                     # carry to next layer

    @pl.when(l == pl.num_programs(1) - 1)
    def _write():
        o_ref[0] = h2.astype(o_ref.dtype)                              # single HBM writeback


def codetr_encoder(patches, pos, stem_w, stem_b,
                   wqk, wv, wo, w1, w2, b_qk, b1, vecs, *,
                   num_heads, head_dim, num_layers, eps=1e-5,
                   mxu_dtype=jnp.bfloat16):
    """Fused stem + L ConditionalDETR encoder layers. grid=(B, L): batch parallel, layers arbitrary."""
    B, S, K = patches.shape
    D = num_heads * head_dim
    F = w1.shape[-1]
    kernel = functools.partial(_codetr_fused_kernel,
                               num_heads=num_heads, head_dim=head_dim,
                               eps=eps, mxu_dtype=mxu_dtype)

    def const(shape):          # same block for every grid point
        nd = len(shape)
        return pl.BlockSpec(shape, lambda b, l: (0,) * nd)

    def per_layer(shape):      # stacked (L, *shape), block-indexed by the layer axis
        nd = len(shape)
        return pl.BlockSpec((1,) + shape, lambda b, l: (l,) + (0,) * nd)

    return pl.pallas_call(
        kernel,
        out_shape=jax.ShapeDtypeStruct((B, S, D), jnp.float32),
        grid=(B, num_layers),
        in_specs=[
            pl.BlockSpec((1, S, K), lambda b, l: (b, 0, 0)),   # patches (per image)
            const((S, D)),                                     # pos (shared)
            const((K, D)), const((1, D)),                      # stem_w / stem_b
            per_layer((D, 2 * D)),                             # wqk
            per_layer((D, D)),                                 # wv
            per_layer((D, D)),                                 # wo
            per_layer((D, F)),                                 # w1
            per_layer((F, D)),                                 # w2
            per_layer((1, 2 * D)),                             # b_qk
            per_layer((1, F)),                                 # b1
            per_layer((8, D)),                                 # packed small vectors
        ],
        out_specs=pl.BlockSpec((1, S, D), lambda b, l: (b, 0, 0)),
        scratch_shapes=[pltpu.VMEM((S, D), jnp.float32)],      # resident hidden state
        compiler_params=pltpu.CompilerParams(
            dimension_semantics=("parallel", "arbitrary")),
    )(patches, pos, stem_w, stem_b, wqk, wv, wo, w1, w2, b_qk, b1, vecs)


# ------------------------------------------------------------------
# Glue: sine positional embedding (DETR / ConditionalDETR, all-ones mask)
# ------------------------------------------------------------------


def sine_position_embedding(h, w, d_model, temperature=10000.0):
    num_pos_feats = d_model // 2
    eps = 1e-6
    scale = 2.0 * math.pi
    y_embed = jnp.arange(1, h + 1, dtype=jnp.float32)[:, None] * jnp.ones((1, w), jnp.float32)
    x_embed = jnp.arange(1, w + 1, dtype=jnp.float32)[None, :] * jnp.ones((h, 1), jnp.float32)
    y_embed = y_embed / (y_embed[-1:, :] + eps) * scale
    x_embed = x_embed / (x_embed[:, -1:] + eps) * scale
    dim_t = jnp.arange(num_pos_feats, dtype=jnp.float32)
    dim_t = temperature ** (2.0 * jnp.floor(dim_t / 2.0) / num_pos_feats)
    pos_x = x_embed[:, :, None] / dim_t
    pos_y = y_embed[:, :, None] / dim_t
    pos_x = jnp.stack([jnp.sin(pos_x[:, :, 0::2]), jnp.cos(pos_x[:, :, 1::2])], axis=3).reshape(h, w, -1)
    pos_y = jnp.stack([jnp.sin(pos_y[:, :, 0::2]), jnp.cos(pos_y[:, :, 1::2])], axis=3).reshape(h, w, -1)
    pos = jnp.concatenate([pos_y, pos_x], axis=2)              # (h, w, d_model)
    return pos.reshape(h * w, d_model)


# ------------------------------------------------------------------
# CoDETRVisionTower forward (synthetic, deterministic weights)
# ------------------------------------------------------------------


class CoDETRVisionTowerPallas:
    # TODO(synk): the real CoDETRVisionTower loads a pretrained HF ConditionalDETR
    # (ResNet backbone + 6-layer encoder) checkpoint and a PIL image processor
    # (expand2square + resize); here the backbone is a strided patchify conv and the
    # encoder is 2 layers with deterministic random weights (no checkpoint / PIL).

    def __init__(self, in_channels=4, patch=4, backbone_dim=8,
                 d_model=128, num_heads=4, ffn_dim=256, num_layers=2,
                 select_feature="cls_patch", seed=0, mxu_dtype=jnp.bfloat16):
        assert d_model % num_heads == 0
        self.in_channels = in_channels
        self.patch = patch
        self.backbone_dim = backbone_dim
        self.d_model = d_model
        self.num_heads = num_heads
        self.head_dim = d_model // num_heads
        self.ffn_dim = ffn_dim
        self.num_layers = num_layers
        self.select_feature = select_feature
        self.mxu_dtype = mxu_dtype            # bf16 MXU operands; set jnp.float32 for reference
        self.params = self._init_params(jax.random.PRNGKey(seed))

    def _init_params(self, key):
        D, F, L = self.d_model, self.ffn_dim, self.num_layers

        def dense(k, fan_in, fan_out):
            w = jax.random.normal(k, (fan_in, fan_out), jnp.float32) * (1.0 / math.sqrt(fan_in))
            b = jnp.zeros((fan_out,), jnp.float32)
            return w, b

        keys = jax.random.split(key, 2 + 6 * L)
        p = {}
        # backbone patchify conv + 1x1 input projection folded into one matmul
        K = self.in_channels * self.patch * self.patch
        patch_w, patch_b = dense(keys[0], K, self.backbone_dim)
        proj_w, proj_b = dense(keys[1], self.backbone_dim, D)
        p["stem_w"] = (patch_w @ proj_w).astype(self.mxu_dtype)          # (K, D)
        p["stem_b"] = (patch_b @ proj_w + proj_b).reshape(1, D)

        ones, zeros = jnp.ones((D,), jnp.float32), jnp.zeros((D,), jnp.float32)
        wqk_l, wv_l, wo_l, w1_l, w2_l, bqk_l, b1_l, vecs_l = ([] for _ in range(8))
        for l in range(L):
            k = keys[2 + 6 * l: 2 + 6 * (l + 1)]
            wq, bq = dense(k[0], D, D)
            wk, bk = dense(k[1], D, D)
            wv, bv = dense(k[2], D, D)
            wo, bo = dense(k[3], D, D)
            w1, b1 = dense(k[4], D, F)
            w2, b2 = dense(k[5], F, D)
            wqk_l.append(jnp.concatenate([wq, wk], axis=1))              # (D, 2D) (pos folded in kernel)
            wv_l.append(wv)
            wo_l.append(wo)
            w1_l.append(w1)
            w2_l.append(w2)
            bqk_l.append(jnp.concatenate([bq, bk]).reshape(1, 2 * D))
            b1_l.append(b1.reshape(1, F))
            # packed per-layer vectors: [b_v, b_o, ln1_g, ln1_b, b2, ln2_g, ln2_b, pad]
            vecs_l.append(jnp.stack([bv, bo, ones, zeros, b2, ones, zeros, zeros]))

        p["wqk"] = jnp.stack(wqk_l).astype(self.mxu_dtype)               # (L, D, 2D)
        p["wv"] = jnp.stack(wv_l).astype(self.mxu_dtype)                 # (L, D, D)
        p["wo"] = jnp.stack(wo_l).astype(self.mxu_dtype)                 # (L, D, D)
        p["w1"] = jnp.stack(w1_l).astype(self.mxu_dtype)                 # (L, D, F)
        p["w2"] = jnp.stack(w2_l).astype(self.mxu_dtype)                 # (L, F, D)
        p["b_qk"] = jnp.stack(bqk_l)                                     # (L, 1, 2D) f32
        p["b1"] = jnp.stack(b1_l)                                        # (L, 1, F)  f32
        p["vecs"] = jnp.stack(vecs_l)                                    # (L, 8, D)  f32
        return p

    def feature_select(self, encoder_last_hidden_state):
        if self.select_feature == "patch":
            # NOTE: this encoder has no CLS token (S = fh*fw patches), so 'patch' would
            # drop the first spatial patch; kept only for interface parity.
            return encoder_last_hidden_state[:, 1:]
        elif self.select_feature == "cls_patch":
            return encoder_last_hidden_state
        raise ValueError(f"Unexpected select feature: {self.select_feature}")

    def __call__(self, images):
        """images: NCHW float array (B, C, H, W)."""
        p = self.params
        in_dtype = images.dtype
        x = jnp.asarray(images, jnp.float32)
        B, C, H, W = x.shape
        assert C == self.in_channels and H % self.patch == 0 and W % self.patch == 0
        fh, fw = H // self.patch, W // self.patch
        S = fh * fw

        # --- im2col glue (layout only) ---
        x_nhwc = jnp.transpose(x, (0, 2, 3, 1))                        # NHWC
        patches = x_nhwc.reshape(B, fh, self.patch, fw, self.patch, C)
        patches = jnp.transpose(patches, (0, 1, 3, 2, 4, 5))           # (B, fh, fw, p, p, C)
        patches = patches.reshape(B, S, self.patch * self.patch * C)

        # --- sine positional embedding (shared across batch, passed once) ---
        pos = sine_position_embedding(fh, fw, self.d_model)            # (S, D) f32

        # --- single fused pallas_call: stem + all encoder layers ---
        h = codetr_encoder(
            patches.astype(self.mxu_dtype), pos, p["stem_w"], p["stem_b"],
            p["wqk"], p["wv"], p["wo"], p["w1"], p["w2"],
            p["b_qk"], p["b1"], p["vecs"],
            num_heads=self.num_heads, head_dim=self.head_dim,
            num_layers=self.num_layers, mxu_dtype=self.mxu_dtype)      # (B, S, D) f32

        encoder_last_hidden_state = h
        return self.feature_select(encoder_last_hidden_state).astype(in_dtype)


# ------------------------------------------------------------------
# main
# ------------------------------------------------------------------

if __name__ == "__main__":
    key = jax.random.PRNGKey(0)
    B, C, H, W = 2, 4, 16, 16
    images = jax.random.normal(key, (B, C, H, W), jnp.float32)  # NCHW like PyTorch

    tower = CoDETRVisionTowerPallas(in_channels=C, patch=4, backbone_dim=8,
                                    d_model=128, num_heads=4, ffn_dim=256,
                                    num_layers=2, select_feature="cls_patch", seed=0)
    out = tower(images)
    out = jax.block_until_ready(out)
    assert out.shape == (B, (H // 4) * (W // 4), 128), out.shape
    assert out.dtype == images.dtype
    assert bool(jnp.all(jnp.isfinite(out)))
    print("KERNEL_OK")
</pallas_src>

<mosaic_0001>
module attributes {stable_mosaic.version = 11 : i64} {
  func.func @_codetr_fused_kernel(%arg0: i32, %arg1: i32, %arg2: memref<1x16x64xbf16, #tpu.memory_space<vmem>>, %arg3: memref<16x128xf32, #tpu.memory_space<vmem>>, %arg4: memref<64x128xbf16, #tpu.memory_space<vmem>>, %arg5: memref<1x128xf32, #tpu.memory_space<vmem>>, %arg6: memref<1x128x256xbf16, #tpu.memory_space<vmem>>, %arg7: memref<1x128x128xbf16, #tpu.memory_space<vmem>>, %arg8: memref<1x128x128xbf16, #tpu.memory_space<vmem>>, %arg9: memref<1x128x256xbf16, #tpu.memory_space<vmem>>, %arg10: memref<1x256x128xbf16, #tpu.memory_space<vmem>>, %arg11: memref<1x1x256xf32, #tpu.memory_space<vmem>>, %arg12: memref<1x1x256xf32, #tpu.memory_space<vmem>>, %arg13: memref<1x8x128xf32, #tpu.memory_space<vmem>>, %arg14: memref<1x16x128xf32, #tpu.memory_space<vmem>>, %arg15: memref<16x128xf32, #tpu.memory_space<vmem>>) attributes {dimension_semantics = [#tpu.dimension_semantics<parallel>, #tpu.dimension_semantics<arbitrary>], iteration_bounds = array<i64: 2, 2>, scalar_prefetch = 0 : i64, scratch_operands = 1 : i64, tpu.core_type = #tpu.core_type<tc>, window_params = [{transform_indices = @transform_0, window_bounds = array<i64: 1, 16, 64>}, {pipeline_mode = #tpu.pipeline_mode<synchronous>, transform_indices = @transform_1, window_bounds = array<i64: 16, 128>}, {pipeline_mode = #tpu.pipeline_mode<synchronous>, transform_indices = @transform_2, window_bounds = array<i64: 64, 128>}, {pipeline_mode = #tpu.pipeline_mode<synchronous>, transform_indices = @transform_3, window_bounds = array<i64: 1, 128>}, {transform_indices = @transform_4, window_bounds = array<i64: 1, 128, 256>}, {transform_indices = @transform_5, window_bounds = array<i64: 1, 128, 128>}, {transform_indices = @transform_6, window_bounds = array<i64: 1, 128, 128>}, {transform_indices = @transform_7, window_bounds = array<i64: 1, 128, 256>}, {transform_indices = @transform_8, window_bounds = array<i64: 1, 256, 128>}, {transform_indices = @transform_9, window_bounds = array<i64: 1, 1, 256>}, {transform_indices = @transform_10, window_bounds = array<i64: 1, 1, 256>}, {transform_indices = @transform_11, window_bounds = array<i64: 1, 8, 128>}, {transform_indices = @transform_12, window_bounds = array<i64: 1, 16, 128>}]} {
    %c0_i32 = arith.constant 0 : i32
    %0 = arith.cmpi eq, %arg1, %c0_i32 : i32
    %1 = arith.extui %0 : i1 to i32
    %c0_i32_0 = arith.constant 0 : i32
    %2 = arith.cmpi ne, %1, %c0_i32_0 : i32
    scf.if %2 {
      %c0_66 = arith.constant 0 : index
      %c0_67 = arith.constant 0 : index
      %c0_68 = arith.constant 0 : index
      %188 = vector.load %arg2[%c0_66, %c0_67, %c0_68] : memref<1x16x64xbf16, #tpu.memory_space<vmem>>, vector<1x16x64xbf16>
      %189 = vector.shape_cast %188 : vector<1x16x64xbf16> to vector<16x64xbf16>
      %c0_69 = arith.constant 0 : index
      %c0_70 = arith.constant 0 : index
      %190 = vector.load %arg4[%c0_69, %c0_70] : memref<64x128xbf16, #tpu.memory_space<vmem>>, vector<64x128xbf16>
      %cst_71 = arith.constant dense<0.000000e+00> : vector<16x128xf32>
      %191 = tpu.matmul %189, %190, %cst_71 {dimension_numbers = #tpu.dot_dimension_numbers<[1], [0], [0], [1], [0, 0, 1, 1], [], []>} : vector<16x64xbf16>, vector<64x128xbf16>, vector<16x128xf32> -> vector<16x128xf32>
      %c0_72 = arith.constant 0 : index
      %c0_73 = arith.constant 0 : index
      %192 = vector.load %arg5[%c0_72, %c0_73] : memref<1x128xf32, #tpu.memory_space<vmem>>, vector<1x128xf32>
      %193 = vector.broadcast %192 : vector<1x128xf32> to vector<16x128xf32>
      %194 = arith.addf %191, %193 : vector<16x128xf32>
      %c0_74 = arith.constant 0 : index
      %c0_75 = arith.constant 0 : index
      %195 = vector.load %arg15[%c0_74, %c0_75] : memref<16x128xf32, #tpu.memory_space<vmem>>, vector<16x128xf32>
      tpu.vector_store %arg15[%c0_74, %c0_75], %194 {strides = array<i32>} : memref<16x128xf32, #tpu.memory_space<vmem>>, vector<16x128xf32>,
    } else {
    }
    %c0 = arith.constant 0 : index
    %c0_1 = arith.constant 0 : index
    %3 = vector.load %arg15[%c0, %c0_1] : memref<16x128xf32, #tpu.memory_space<vmem>>, vector<16x128xf32>
    %c0_2 = arith.constant 0 : index
    %c0_3 = arith.constant 0 : index
    %4 = vector.load %arg3[%c0_2, %c0_3] : memref<16x128xf32, #tpu.memory_space<vmem>>, vector<16x128xf32>
    %c0_4 = arith.constant 0 : index
    %c0_5 = arith.constant 0 : index
    %c0_6 = arith.constant 0 : index
    %5 = vector.load %arg13[%c0_4, %c0_5, %c0_6] : memref<1x8x128xf32, #tpu.memory_space<vmem>>, vector<1x8x128xf32>
    %6 = vector.shape_cast %5 : vector<1x8x128xf32> to vector<8x128xf32>
    %7 = vector.extract_strided_slice %6 {offsets = [0, 0], sizes = [1, 128], strides = [1, 1]} : vector<8x128xf32> to vector<1x128xf32>
    %8 = vector.extract_strided_slice %6 {offsets = [1, 0], sizes = [1, 128], strides = [1, 1]} : vector<8x128xf32> to vector<1x128xf32>
    %9 = vector.extract_strided_slice %6 {offsets = [2, 0], sizes = [1, 128], strides = [1, 1]} : vector<8x128xf32> to vector<1x128xf32>
    %10 = vector.extract_strided_slice %6 {offsets = [3, 0], sizes = [1, 128], strides = [1, 1]} : vector<8x128xf32> to vector<1x128xf32>
    %11 = vector.extract_strided_slice %6 {offsets = [4, 0], sizes = [1, 128], strides = [1, 1]} : vector<8x128xf32> to vector<1x128xf32>
    %12 = vector.extract_strided_slice %6 {offsets = [5, 0], sizes = [1, 128], strides = [1, 1]} : vector<8x128xf32> to vector<1x128xf32>
    %13 = vector.extract_strided_slice %6 {offsets = [6, 0], sizes = [1, 128], strides = [1, 1]} : vector<8x128xf32> to vector<1x128xf32>
    %14 = arith.addf %3, %4 : vector<16x128xf32>
    %15 = arith.truncf %14 : vector<16x128xf32> to vector<16x128xbf16>
    %c0_7 = arith.constant 0 : index
    %c0_8 = arith.constant 0 : index
    %c0_9 = arith.constant 0 : index
    %16 = vector.load %arg6[%c0_7, %c0_8, %c0_9] : memref<1x128x256xbf16, #tpu.memory_space<vmem>>, vector<1x128x256xbf16>
    %17 = vector.shape_cast %16 : vector<1x128x256xbf16> to vector<128x256xbf16>
    %cst = arith.constant dense<0.000000e+00> : vector<16x256xf32>
    %18 = tpu.matmul %15, %17, %cst {dimension_numbers = #tpu.dot_dimension_numbers<[1], [0], [0], [1], [0, 0, 1, 1], [], []>} : vector<16x128xbf16>, vector<128x256xbf16>, vector<16x256xf32> -> vector<16x256xf32>
    %c0_10 = arith.constant 0 : index
    %c0_11 = arith.constant 0 : index
    %c0_12 = arith.constant 0 : index
    %19 = vector.load %arg11[%c0_10, %c0_11, %c0_12] : memref<1x1x256xf32, #tpu.memory_space<vmem>>, vector<1x1x256xf32>
    %20 = vector.shape_cast %19 : vector<1x1x256xf32> to vector<1x256xf32>
    %21 = vector.broadcast %20 : vector<1x256xf32> to vector<16x256xf32>
    %22 = arith.addf %18, %21 : vector<16x256xf32>
    %23 = arith.truncf %3 : vector<16x128xf32> to vector<16x128xbf16>
    %c0_13 = arith.constant 0 : index
    %c0_14 = arith.constant 0 : index
    %c0_15 = arith.constant 0 : index
    %24 = vector.load %arg7[%c0_13, %c0_14, %c0_15] : memref<1x128x128xbf16, #tpu.memory_space<vmem>>, vector<1x128x128xbf16>
    %25 = vector.shape_cast %24 : vector<1x128x128xbf16> to vector<128x128xbf16>
    %cst_16 = arith.constant dense<0.000000e+00> : vector<16x128xf32>
    %26 = tpu.matmul %23, %25, %cst_16 {dimension_numbers = #tpu.dot_dimension_numbers<[1], [0], [0], [1], [0, 0, 1, 1], [], []>} : vector<16x128xbf16>, vector<128x128xbf16>, vector<16x128xf32> -> vector<16x128xf32>
    %27 = vector.broadcast %7 : vector<1x128xf32> to vector<16x128xf32>
    %28 = arith.addf %26, %27 : vector<16x128xf32>
    %29 = vector.extract_strided_slice %22 {offsets = [0, 0], sizes = [16, 128], strides = [1, 1]} : vector<16x256xf32> to vector<16x128xf32>
    %30 = vector.extract_strided_slice %22 {offsets = [0, 128], sizes = [16, 128], strides = [1, 1]} : vector<16x256xf32> to vector<16x128xf32>
    %31 = vector.extract_strided_slice %29 {offsets = [0, 0], sizes = [16, 32], strides = [1, 1]} : vector<16x128xf32> to vector<16x32xf32>
    %cst_17 = arith.constant 0.176776692 : f32
    %32 = vector.broadcast %cst_17 : f32 to vector<16x32xf32>
    %33 = arith.mulf %31, %32 : vector<16x32xf32>
    %34 = arith.truncf %33 : vector<16x32xf32> to vector<16x32xbf16>
    %35 = vector.extract_strided_slice %30 {offsets = [0, 0], sizes = [16, 32], strides = [1, 1]} : vector<16x128xf32> to vector<16x32xf32>
    %36 = arith.truncf %35 : vector<16x32xf32> to vector<16x32xbf16>
    %37 = vector.extract_strided_slice %28 {offsets = [0, 0], sizes = [16, 32], strides = [1, 1]} : vector<16x128xf32> to vector<16x32xf32>
    %38 = arith.truncf %37 : vector<16x32xf32> to vector<16x32xbf16>
    %cst_18 = arith.constant dense<0.000000e+00> : vector<16x16xf32>
    %39 = tpu.matmul %34, %36, %cst_18 {dimension_numbers = #tpu.dot_dimension_numbers<[1], [1], [0], [0], [0, 0, 1, 0], [], []>} : vector<16x32xbf16>, vector<16x32xbf16>, vector<16x16xf32> -> vector<16x16xf32>
    %cst_19 = arith.constant dense<0xFF800000> : vector<16xf32>
    %40 = vector.multi_reduction <maximumf>, %39, %cst_19 [1] : vector<16x16xf32> to vector<16xf32>
    %41 = vector.shape_cast %40 : vector<16xf32> to vector<16x1xf32>
    %42 = vector.broadcast %41 : vector<16x1xf32> to vector<16x16xf32>
    %43 = arith.subf %39, %42 : vector<16x16xf32>
    %44 = math.exp %43 : vector<16x16xf32>
    %cst_20 = arith.constant dense<0.000000e+00> : vector<16xf32>
    %45 = vector.multi_reduction <add>, %44, %cst_20 [1] : vector<16x16xf32> to vector<16xf32>
    %46 = vector.shape_cast %45 : vector<16xf32> to vector<16x1xf32>
    %47 = tpu.reciprocal %46 {approx = true} : vector<16x1xf32> -> vector<16x1xf32>
    %48 = vector.broadcast %47 : vector<16x1xf32> to vector<16x16xf32>
    %49 = arith.mulf %44, %48 : vector<16x16xf32>
    %50 = arith.truncf %49 : vector<16x16xf32> to vector<16x16xbf16>
    %cst_21 = arith.constant dense<0.000000e+00> : vector<16x32xf32>
    %51 = tpu.matmul %50, %38, %cst_21 {dimension_numbers = #tpu.dot_dimension_numbers<[1], [0], [0], [1], [0, 0, 1, 1], [], []>} : vector<16x16xbf16>, vector<16x32xbf16>, vector<16x32xf32> -> vector<16x32xf32>
    %52 = vector.extract_strided_slice %29 {offsets = [0, 32], sizes = [16, 32], strides = [1, 1]} : vector<16x128xf32> to vector<16x32xf32>
    %cst_22 = arith.constant 0.176776692 : f32
    %53 = vector.broadcast %cst_22 : f32 to vector<16x32xf32>
    %54 = arith.mulf %52, %53 : vector<16x32xf32>
    %55 = arith.truncf %54 : vector<16x32xf32> to vector<16x32xbf16>
    %56 = vector.extract_strided_slice %30 {offsets = [0, 32], sizes = [16, 32], strides = [1, 1]} : vector<16x128xf32> to vector<16x32xf32>
    %57 = arith.truncf %56 : vector<16x32xf32> to vector<16x32xbf16>
    %58 = vector.extract_strided_slice %28 {offsets = [0, 32], sizes = [16, 32], strides = [1, 1]} : vector<16x128xf32> to vector<16x32xf32>
    %59 = arith.truncf %58 : vector<16x32xf32> to vector<16x32xbf16>
    %cst_23 = arith.constant dense<0.000000e+00> : vector<16x16xf32>
    %60 = tpu.matmul %55, %57, %cst_23 {dimension_numbers = #tpu.dot_dimension_numbers<[1], [1], [0], [0], [0, 0, 1, 0], [], []>} : vector<16x32xbf16>, vector<16x32xbf16>, vector<16x16xf32> -> vector<16x16xf32>
    %cst_24 = arith.constant dense<0xFF800000> : vector<16xf32>
    %61 = vector.multi_reduction <maximumf>, %60, %cst_24 [1] : vector<16x16xf32> to vector<16xf32>
    %62 = vector.shape_cast %61 : vector<16xf32> to vector<16x1xf32>
    %63 = vector.broadcast %62 : vector<16x1xf32> to vector<16x16xf32>
    %64 = arith.subf %60, %63 : vector<16x16xf32>
    %65 = math.exp %64 : vector<16x16xf32>
    %cst_25 = arith.constant dense<0.000000e+00> : vector<16xf32>
    %66 = vector.multi_reduction <add>, %65, %cst_25 [1] : vector<16x16xf32> to vector<16xf32>
    %67 = vector.shape_cast %66 : vector<16xf32> to vector<16x1xf32>
    %68 = tpu.reciprocal %67 {approx = true} : vector<16x1xf32> -> vector<16x1xf32>
    %69 = vector.broadcast %68 : vector<16x1xf32> to vector<16x16xf32>
    %70 = arith.mulf %65, %69 : vector<16x16xf32>
    %71 = arith.truncf %70 : vector<16x16xf32> to vector<16x16xbf16>
    %cst_26 = arith.constant dense<0.000000e+00> : vector<16x32xf32>
    %72 = tpu.matmul %71, %59, %cst_26 {dimension_numbers = #tpu.dot_dimension_numbers<[1], [0], [0], [1], [0, 0, 1, 1], [], []>} : vector<16x16xbf16>, vector<16x32xbf16>, vector<16x32xf32> -> vector<16x32xf32>
    %73 = vector.extract_strided_slice %29 {offsets = [0, 64], sizes = [16, 32], strides = [1, 1]} : vector<16x128xf32> to vector<16x32xf32>
    %cst_27 = arith.constant 0.176776692 : f32
    %74 = vector.broadcast %cst_27 : f32 to vector<16x32xf32>
    %75 = arith.mulf %73, %74 : vector<16x32xf32>
    %76 = arith.truncf %75 : vector<16x32xf32> to vector<16x32xbf16>
    %77 = vector.extract_strided_slice %30 {offsets = [0, 64], sizes = [16, 32], strides = [1, 1]} : vector<16x128xf32> to vector<16x32xf32>
    %78 = arith.truncf %77 : vector<16x32xf32> to vector<16x32xbf16>
    %79 = vector.extract_strided_slice %28 {offsets = [0, 64], sizes = [16, 32], strides = [1, 1]} : vector<16x128xf32> to vector<16x32xf32>
    %80 = arith.truncf %79 : vector<16x32xf32> to vector<16x32xbf16>
    %cst_28 = arith.constant dense<0.000000e+00> : vector<16x16xf32>
    %81 = tpu.matmul %76, %78, %cst_28 {dimension_numbers = #tpu.dot_dimension_numbers<[1], [1], [0], [0], [0, 0, 1, 0], [], []>} : vector<16x32xbf16>, vector<16x32xbf16>, vector<16x16xf32> -> vector<16x16xf32>
    %cst_29 = arith.constant dense<0xFF800000> : vector<16xf32>
    %82 = vector.multi_reduction <maximumf>, %81, %cst_29 [1] : vector<16x16xf32> to vector<16xf32>
    %83 = vector.shape_cast %82 : vector<16xf32> to vector<16x1xf32>
    %84 = vector.broadcast %83 : vector<16x1xf32> to vector<16x16xf32>
    %85 = arith.subf %81, %84 : vector<16x16xf32>
    %86 = math.exp %85 : vector<16x16xf32>
    %cst_30 = arith.constant dense<0.000000e+00> : vector<16xf32>
    %87 = vector.multi_reduction <add>, %86, %cst_30 [1] : vector<16x16xf32> to vector<16xf32>
    %88 = vector.shape_cast %87 : vector<16xf32> to vector<16x1xf32>
    %89 = tpu.reciprocal %88 {approx = true} : vector<16x1xf32> -> vector<16x1xf32>
    %90 = vector.broadcast %89 : vector<16x1xf32> to vector<16x16xf32>
    %91 = arith.mulf %86, %90 : vector<16x16xf32>
    %92 = arith.truncf %91 : vector<16x16xf32> to vector<16x16xbf16>
    %cst_31 = arith.constant dense<0.000000e+00> : vector<16x32xf32>
    %93 = tpu.matmul %92, %80, %cst_31 {dimension_numbers = #tpu.dot_dimension_numbers<[1], [0], [0], [1], [0, 0, 1, 1], [], []>} : vector<16x16xbf16>, vector<16x32xbf16>, vector<16x32xf32> -> vector<16x32xf32>
    %94 = vector.extract_strided_slice %29 {offsets = [0, 96], sizes = [16, 32], strides = [1, 1]} : vector<16x128xf32> to vector<16x32xf32>
    %cst_32 = arith.constant 0.176776692 : f32
    %95 = vector.broadcast %cst_32 : f32 to vector<16x32xf32>
    %96 = arith.mulf %94, %95 : vector<16x32xf32>
    %97 = arith.truncf %96 : vector<16x32xf32> to vector<16x32xbf16>
    %98 = vector.extract_strided_slice %30 {offsets = [0, 96], sizes = [16, 32], strides = [1, 1]} : vector<16x128xf32> to vector<16x32xf32>
    %99 = arith.truncf %98 : vector<16x32xf32> to vector<16x32xbf16>
    %100 = vector.extract_strided_slice %28 {offsets = [0, 96], sizes = [16, 32], strides = [1, 1]} : vector<16x128xf32> to vector<16x32xf32>
    %101 = arith.truncf %100 : vector<16x32xf32> to vector<16x32xbf16>
    %cst_33 = arith.constant dense<0.000000e+00> : vector<16x16xf32>
    %102 = tpu.matmul %97, %99, %cst_33 {dimension_numbers = #tpu.dot_dimension_numbers<[1], [1], [0], [0], [0, 0, 1, 0], [], []>} : vector<16x32xbf16>, vector<16x32xbf16>, vector<16x16xf32> -> vector<16x16xf32>
    %cst_34 = arith.constant dense<0xFF800000> : vector<16xf32>
    %103 = vector.multi_reduction <maximumf>, %102, %cst_34 [1] : vector<16x16xf32> to vector<16xf32>
    %104 = vector.shape_cast %103 : vector<16xf32> to vector<16x1xf32>
    %105 = vector.broadcast %104 : vector<16x1xf32> to vector<16x16xf32>
    %106 = arith.subf %102, %105 : vector<16x16xf32>
    %107 = math.exp %106 : vector<16x16xf32>
    %cst_35 = arith.constant dense<0.000000e+00> : vector<16xf32>
    %108 = vector.multi_reduction <add>, %107, %cst_35 [1] : vector<16x16xf32> to vector<16xf32>
    %109 = vector.shape_cast %108 : vector<16xf32> to vector<16x1xf32>
    %110 = tpu.reciprocal %109 {approx = true} : vector<16x1xf32> -> vector<16x1xf32>
    %111 = vector.broadcast %110 : vector<16x1xf32> to vector<16x16xf32>
    %112 = arith.mulf %107, %111 : vector<16x16xf32>
    %113 = arith.truncf %112 : vector<16x16xf32> to vector<16x16xbf16>
    %cst_36 = arith.constant dense<0.000000e+00> : vector<16x32xf32>
    %114 = tpu.matmul %113, %101, %cst_36 {dimension_numbers = #tpu.dot_dimension_numbers<[1], [0], [0], [1], [0, 0, 1, 1], [], []>} : vector<16x16xbf16>, vector<16x32xbf16>, vector<16x32xf32> -> vector<16x32xf32>
    %115 = tpu.concatenate %51, %72, %93, %114 in 1 : vector<16x32xf32>, vector<16x32xf32>, vector<16x32xf32>, vector<16x32xf32> -> vector<16x128xf32>
    %116 = arith.truncf %115 : vector<16x128xf32> to vector<16x128xbf16>
    %c0_37 = arith.constant 0 : index
    %c0_38 = arith.constant 0 : index
    %c0_39 = arith.constant 0 : index
    %117 = vector.load %arg8[%c0_37, %c0_38, %c0_39] : memref<1x128x128xbf16, #tpu.memory_space<vmem>>, vector<1x128x128xbf16>
    %118 = vector.shape_cast %117 : vector<1x128x128xbf16> to vector<128x128xbf16>
    %cst_40 = arith.constant dense<0.000000e+00> : vector<16x128xf32>
    %119 = tpu.matmul %116, %118, %cst_40 {dimension_numbers = #tpu.dot_dimension_numbers<[1], [0], [0], [1], [0, 0, 1, 1], [], []>} : vector<16x128xbf16>, vector<128x128xbf16>, vector<16x128xf32> -> vector<16x128xf32>
    %120 = vector.broadcast %8 : vector<1x128xf32> to vector<16x128xf32>
    %121 = arith.addf %119, %120 : vector<16x128xf32>
    %122 = arith.addf %3, %121 : vector<16x128xf32>
    %cst_41 = arith.constant dense<0.000000e+00> : vector<16xf32>
    %123 = vector.multi_reduction <add>, %122, %cst_41 [1] : vector<16x128xf32> to vector<16xf32>
    %124 = vector.shape_cast %123 : vector<16xf32> to vector<16x1xf32>
    %cst_42 = arith.constant 1.280000e+02 : f32
    %125 = vector.broadcast %cst_42 : f32 to vector<16x1xf32>
    %126 = arith.divf %124, %125 : vector<16x1xf32>
    %127 = vector.broadcast %126 : vector<16x1xf32> to vector<16x128xf32>
    %128 = arith.subf %122, %127 : vector<16x128xf32>
    %129 = arith.mulf %128, %128 : vector<16x128xf32>
    %cst_43 = arith.constant dense<0.000000e+00> : vector<16xf32>
    %130 = vector.multi_reduction <add>, %129, %cst_43 [1] : vector<16x128xf32> to vector<16xf32>
    %131 = vector.shape_cast %130 : vector<16xf32> to vector<16x1xf32>
    %cst_44 = arith.constant 1.280000e+02 : f32
    %132 = vector.broadcast %cst_44 : f32 to vector<16x1xf32>
    %133 = arith.divf %131, %132 : vector<16x1xf32>
    %134 = vector.broadcast %126 : vector<16x1xf32> to vector<16x128xf32>
    %135 = arith.subf %122, %134 : vector<16x128xf32>
    %cst_45 = arith.constant 9.99999974E-6 : f32
    %136 = vector.broadcast %cst_45 : f32 to vector<16x1xf32>
    %137 = arith.addf %133, %136 : vector<16x1xf32>
    %138 = math.rsqrt %137 : vector<16x1xf32>
    %139 = vector.broadcast %138 : vector<16x1xf32> to vector<16x128xf32>
    %140 = arith.mulf %135, %139 : vector<16x128xf32>
    %141 = vector.broadcast %9 : vector<1x128xf32> to vector<16x128xf32>
    %142 = arith.mulf %140, %141 : vector<16x128xf32>
    %143 = vector.broadcast %10 : vector<1x128xf32> to vector<16x128xf32>
    %144 = arith.addf %142, %143 : vector<16x128xf32>
    %145 = arith.truncf %144 : vector<16x128xf32> to vector<16x128xbf16>
    %c0_46 = arith.constant 0 : index
    %c0_47 = arith.constant 0 : index
    %c0_48 = arith.constant 0 : index
    %146 = vector.load %arg9[%c0_46, %c0_47, %c0_48] : memref<1x128x256xbf16, #tpu.memory_space<vmem>>, vector<1x128x256xbf16>
    %147 = vector.shape_cast %146 : vector<1x128x256xbf16> to vector<128x256xbf16>
    %cst_49 = arith.constant dense<0.000000e+00> : vector<16x256xf32>
    %148 = tpu.matmul %145, %147, %cst_49 {dimension_numbers = #tpu.dot_dimension_numbers<[1], [0], [0], [1], [0, 0, 1, 1], [], []>} : vector<16x128xbf16>, vector<128x256xbf16>, vector<16x256xf32> -> vector<16x256xf32>
    %c0_50 = arith.constant 0 : index
    %c0_51 = arith.constant 0 : index
    %c0_52 = arith.constant 0 : index
    %149 = vector.load %arg12[%c0_50, %c0_51, %c0_52] : memref<1x1x256xf32, #tpu.memory_space<vmem>>, vector<1x1x256xf32>
    %150 = vector.shape_cast %149 : vector<1x1x256xf32> to vector<1x256xf32>
    %151 = vector.broadcast %150 : vector<1x256xf32> to vector<16x256xf32>
    %152 = arith.addf %148, %151 : vector<16x256xf32>
    %cst_53 = arith.constant 0.000000e+00 : f32
    %153 = vector.broadcast %cst_53 : f32 to vector<16x256xf32>
    %154 = arith.maximumf %152, %153 : vector<16x256xf32>
    %155 = arith.truncf %154 : vector<16x256xf32> to vector<16x256xbf16>
    %c0_54 = arith.constant 0 : index
    %c0_55 = arith.constant 0 : index
    %c0_56 = arith.constant 0 : index
    %156 = vector.load %arg10[%c0_54, %c0_55, %c0_56] : memref<1x256x128xbf16, #tpu.memory_space<vmem>>, vector<1x256x128xbf16>
    %157 = vector.shape_cast %156 : vector<1x256x128xbf16> to vector<256x128xbf16>
    %cst_57 = arith.constant dense<0.000000e+00> : vector<16x128xf32>
    %158 = tpu.matmul %155, %157, %cst_57 {dimension_numbers = #tpu.dot_dimension_numbers<[1], [0], [0], [1], [0, 0, 1, 1], [], []>} : vector<16x256xbf16>, vector<256x128xbf16>, vector<16x128xf32> -> vector<16x128xf32>
    %159 = vector.broadcast %11 : vector<1x128xf32> to vector<16x128xf32>
    %160 = arith.addf %158, %159 : vector<16x128xf32>
    %161 = arith.addf %144, %160 : vector<16x128xf32>
    %cst_58 = arith.constant dense<0.000000e+00> : vector<16xf32>
    %162 = vector.multi_reduction <add>, %161, %cst_58 [1] : vector<16x128xf32> to vector<16xf32>
    %163 = vector.shape_cast %162 : vector<16xf32> to vector<16x1xf32>
    %cst_59 = arith.constant 1.280000e+02 : f32
    %164 = vector.broadcast %cst_59 : f32 to vector<16x1xf32>
    %165 = arith.divf %163, %164 : vector<16x1xf32>
    %166 = vector.broadcast %165 : vector<16x1xf32> to vector<16x128xf32>
    %167 = arith.subf %161, %166 : vector<16x128xf32>
    %168 = arith.mulf %167, %167 : vector<16x128xf32>
    %cst_60 = arith.constant dense<0.000000e+00> : vector<16xf32>
    %169 = vector.multi_reduction <add>, %168, %cst_60 [1] : vector<16x128xf32> to vector<16xf32>
    %170 = vector.shape_cast %169 : vector<16xf32> to vector<16x1xf32>
    %cst_61 = arith.constant 1.280000e+02 : f32
    %171 = vector.broadcast %cst_61 : f32 to vector<16x1xf32>
    %172 = arith.divf %170, %171 : vector<16x1xf32>
    %173 = vector.broadcast %165 : vector<16x1xf32> to vector<16x128xf32>
    %174 = arith.subf %161, %173 : vector<16x128xf32>
    %cst_62 = arith.constant 9.99999974E-6 : f32
    %175 = vector.broadcast %cst_62 : f32 to vector<16x1xf32>
    %176 = arith.addf %172, %175 : vector<16x1xf32>
    %177 = math.rsqrt %176 : vector<16x1xf32>
    %178 = vector.broadcast %177 : vector<16x1xf32> to vector<16x128xf32>
    %179 = arith.mulf %174, %178 : vector<16x128xf32>
    %180 = vector.broadcast %12 : vector<1x128xf32> to vector<16x128xf32>
    %181 = arith.mulf %179, %180 : vector<16x128xf32>
    %182 = vector.broadcast %13 : vector<1x128xf32> to vector<16x128xf32>
    %183 = arith.addf %181, %182 : vector<16x128xf32>
    %c0_63 = arith.constant 0 : index
    %c0_64 = arith.constant 0 : index
    %184 = vector.load %arg15[%c0_63, %c0_64] : memref<16x128xf32, #tpu.memory_space<vmem>>, vector<16x128xf32>
    tpu.vector_store %arg15[%c0_63, %c0_64], %183 {strides = array<i32>} : memref<16x128xf32, #tpu.memory_space<vmem>>, vector<16x128xf32>,
    %c1_i32 = arith.constant 1 : i32
    %185 = arith.cmpi eq, %arg1, %c1_i32 : i32
    %186 = arith.extui %185 : i1 to i32
    %c0_i32_65 = arith.constant 0 : i32
    %187 = arith.cmpi ne, %186, %c0_i32_65 : i32
    scf.if %187 {
      %c0_66 = arith.constant 0 : index
      %c0_67 = arith.constant 0 : index
      %c0_68 = arith.constant 0 : index
      %188 = vector.load %arg14[%c0_66, %c0_67, %c0_68] : memref<1x16x128xf32, #tpu.memory_space<vmem>>, vector<1x16x128xf32>
      %189 = vector.shape_cast %188 : vector<1x16x128xf32> to vector<16x128xf32>
      %190 = vector.shape_cast %183 : vector<16x128xf32> to vector<1x16x128xf32>
      tpu.vector_store %arg14[%c0_66, %c0_67, %c0_68], %190 {strides = array<i32>} : memref<1x16x128xf32, #tpu.memory_space<vmem>>, vector<1x16x128xf32>,
    } else {
    }
    return
  }
  func.func @transform_0(%arg0: i32, %arg1: i32) -> (i32, i32, i32) {
    %c0_i32 = arith.constant 0 : i32
    %c0_i32_0 = arith.constant 0 : i32
    %c0_i32_1 = arith.constant 0 : i32
    return %arg0, %c0_i32, %c0_i32_0 : i32, i32, i32
  }
  func.func @transform_1(%arg0: i32, %arg1: i32) -> (i32, i32) {
    %c0_i32 = arith.constant 0 : i32
    %c0_i32_0 = arith.constant 0 : i32
    %c0_i32_1 = arith.constant 0 : i32
    return %c0_i32, %c0_i32_0 : i32, i32
  }
  func.func @transform_2(%arg0: i32, %arg1: i32) -> (i32, i32) {
    %c0_i32 = arith.constant 0 : i32
    %c0_i32_0 = arith.constant 0 : i32
    %c0_i32_1 = arith.constant 0 : i32
    return %c0_i32, %c0_i32_0 : i32, i32
  }
  func.func @transform_3(%arg0: i32, %arg1: i32) -> (i32, i32) {
    %c0_i32 = arith.constant 0 : i32
    %c0_i32_0 = arith.constant 0 : i32
    %c0_i32_1 = arith.constant 0 : i32
    return %c0_i32, %c0_i32_0 : i32, i32
  }
  func.func @transform_4(%arg0: i32, %arg1: i32) -> (i32, i32, i32) {
    %c0_i32 = arith.constant 0 : i32
    %c0_i32_0 = arith.constant 0 : i32
    %c0_i32_1 = arith.constant 0 : i32
    return %arg1, %c0_i32, %c0_i32_0 : i32, i32, i32
  }
  func.func @transform_5(%arg0: i32, %arg1: i32) -> (i32, i32, i32) {
    %c0_i32 = arith.constant 0 : i32
    %c0_i32_0 = arith.constant 0 : i32
    %c0_i32_1 = arith.constant 0 : i32
    return %arg1, %c0_i32, %c0_i32_0 : i32, i32, i32
  }
  func.func @transform_6(%arg0: i32, %arg1: i32) -> (i32, i32, i32) {
    %c0_i32 = arith.constant 0 : i32
    %c0_i32_0 = arith.constant 0 : i32
    %c0_i32_1 = arith.constant 0 : i32
    return %arg1, %c0_i32, %c0_i32_0 : i32, i32, i32
  }
  func.func @transform_7(%arg0: i32, %arg1: i32) -> (i32, i32, i32) {
    %c0_i32 = arith.constant 0 : i32
    %c0_i32_0 = arith.constant 0 : i32
    %c0_i32_1 = arith.constant 0 : i32
    return %arg1, %c0_i32, %c0_i32_0 : i32, i32, i32
  }
  func.func @transform_8(%arg0: i32, %arg1: i32) -> (i32, i32, i32) {
    %c0_i32 = arith.constant 0 : i32
    %c0_i32_0 = arith.constant 0 : i32
    %c0_i32_1 = arith.constant 0 : i32
    return %arg1, %c0_i32, %c0_i32_0 : i32, i32, i32
  }
  func.func @transform_9(%arg0: i32, %arg1: i32) -> (i32, i32, i32) {
    %c0_i32 = arith.constant 0 : i32
    %c0_i32_0 = arith.constant 0 : i32
    %c0_i32_1 = arith.constant 0 : i32
    return %arg1, %c0_i32, %c0_i32_0 : i32, i32, i32
  }
  func.func @transform_10(%arg0: i32, %arg1: i32) -> (i32, i32, i32) {
    %c0_i32 = arith.constant 0 : i32
    %c0_i32_0 = arith.constant 0 : i32
    %c0_i32_1 = arith.constant 0 : i32
    return %arg1, %c0_i32, %c0_i32_0 : i32, i32, i32
  }
  func.func @transform_11(%arg0: i32, %arg1: i32) -> (i32, i32, i32) {
    %c0_i32 = arith.constant 0 : i32
    %c0_i32_0 = arith.constant 0 : i32
    %c0_i32_1 = arith.constant 0 : i32
    return %arg1, %c0_i32, %c0_i32_0 : i32, i32, i32
  }
  func.func @transform_12(%arg0: i32, %arg1: i32) -> (i32, i32, i32) {
    %c0_i32 = arith.constant 0 : i32
    %c0_i32_0 = arith.constant 0 : i32
    %c0_i32_1 = arith.constant 0 : i32
    return %arg0, %c0_i32, %c0_i32_0 : i32, i32, i32
  }
}

</mosaic_0001>

<bundles_post_ra>
// kernel: tpu_custom_call.1
= control target key start
LH: loop header
LB: loop body
LE: loop exit
PB: predicated region body
PF: predicated region fallthrough
CT: control target
= control target key end

     0   :  { %s4237_s0 = inlined_call_operand.hbm [shape: bf16[2,16,64], index: 0, kind: input, shape index: {}]   ;;  %s4238_s1 = inlined_call_operand.hbm [shape: f32[16,128], index: 1, kind: input, shape index: {}]   ;;  %s4239_s2 = inlined_call_operand.hbm [shape: bf16[64,128], index: 2, kind: input, shape index: {}]   ;;  %s4240_s3 = inlined_call_operand.vmem [shape: f32[1,128], index: 3, kind: input, shape index: {}]   ;;  %s4241_s4 = inlined_call_operand.hbm [shape: bf16[2,128,256], index: 4, kind: input, shape index: {}]   ;;  %s4242_s5 = inlined_call_operand.hbm [shape: bf16[2,128,128], index: 5, kind: input, shape index: {}]   ;;  %s4243_s6 = inlined_call_operand.hbm [shape: bf16[2,128,128], index: 6, kind: input, shape index: {}]   ;;  %s4244_s7 = inlined_call_operand.hbm [shape: bf16[2,128,256], index: 7, kind: input, shape index: {}]   ;;  %s4245_s8 = inlined_call_operand.hbm [shape: bf16[2,256,128], index: 8, kind: input, shape index: {}]   ;;  %s4246_s9 = inlined_call_operand.vmem [shape: f32[2,1,256], index: 9, kind: input, shape index: {}]   ;;  %s4247_s10 = inlined_call_operand.vmem [shape: f32[2,1,256], index: 10, kind: input, shape index: {}]   ;;  %s4248_s11 = inlined_call_operand.vmem [shape: f32[2,8,128], index: 11, kind: input, shape index: {}]   ;;  %s4249_s12 = inlined_call_operand.hbm [shape: f32[2,16,128], index: 12, kind: output, shape index: {}]  }
   0x1   :  { %4295 = sst [smem:[#allocation39_spill]] %s4237_s0 }
   0x2   :  { %4296 = sst [smem:[#allocation40_spill]] %s4238_s1 }
   0x3   :  { %4297 = sst [smem:[#allocation41_spill]] %s4239_s2 }
   0x4   :  { %4298 = sst [smem:[#allocation42_spill]] %s4240_s3 }
   0x5   :  { %4299 = sst [smem:[#allocation43_spill]] %s4241_s4 }
   0x6   :  { %4300 = sst [smem:[#allocation44_spill]] %s4242_s5 }
   0x7   :  { %4301 = sst [smem:[#allocation45_spill]] %s4243_s6 }
   0x8   :  { %4302 = sst [smem:[#allocation46_spill]] %s4244_s7 }
   0x9   :  { %4303 = sst [smem:[#allocation47_spill]] %s4245_s8 }
   0xa   :  { %4304 = sst [smem:[#allocation48_spill]] %s4246_s9 }
   0xb   :  { %4305 = sst [smem:[#allocation49_spill]] %s4247_s10 }
   0xc   :  { %4306 = sst [smem:[#allocation50_spill]] %s4248_s11 }
   0xd   :  { %4307 = sst [smem:[#allocation51_spill]] %s4249_s12 }
   0xe   :  { %17 = vsyncpa [#allocation4], 0 }
   0xf   :  { %19 = vsyncpa [#allocation4 + $0x1], 0 }
  0x10   :  { %20 = vsyncpa [#allocation7], 0 }
  0x11   :  { %21 = vsyncpa [#allocation10], 0 }
  0x12   :  { %23 = vsyncpa [#allocation10 + $0x1], 0 }
  0x13   :  { %24 = vsyncpa [#allocation13], 0 }
  0x14   :  { %26 = vsyncpa [#allocation13 + $0x1], 0 }
  0x15   :  { %27 = vsyncpa [#allocation16], 0 }
  0x16   :  { %29 = vsyncpa [#allocation16 + $0x1], 0 }
  0x17   :  { %30 = vsyncpa [#allocation5], 0 }
  0x18   :  { %32 = vsyncpa [#allocation5 + $0x1], 0  ;;  %s3445_s21 = smov 0   ;;  %s3447_s22 = smov 0  }
  0x19   :  { %s3449_s23 = smov 0   ;;  %s3451_s24 = smov 0  }
  0x1a   :  { %s3453_s25 = smov 0   ;;  %s3455_s26 = smov 0  }
  0x1b   :  { %s3457_s27 = smov 0   ;;  %s3459_s28 = smov 0  }
  0x1c   :  { %s3461_s29 = smov 0   ;;  %s3463_s30 = smov 0  }
  0x1d   :  { %s3465_s13 = smov 0  }
  0x1e LB: > { %4308 = sst [smem:[#allocation24_spill]] %s3319_s22  ;;  %s3499_s14 = sadd.s32 4294967295, %s3355_s13   ;;  %s3355_s13 = sphi %s3465_s13, %s38_s13   ;;  %s3351_s30 = sphi %s3463_s30, %s4391_s30   ;;  %s3347_s29 = sphi %s3461_s29, %s4385_s29   ;;  %s3343_s28 = sphi %s3459_s28, %s4390_s28   ;;  %s3339_s27 = sphi %s3457_s27, %s4384_s27   ;;  %s3335_s26 = sphi %s3455_s26, %s4389_s26   ;;  %s3331_s25 = sphi %s3453_s25, %s4388_s25   ;;  %s3327_s24 = sphi %s3451_s24, %s4387_s24   ;;  %s3323_s23 = sphi %s3449_s23, %s4383_s23   ;;  %s3319_s22 = sphi %s3447_s22, %s4382_s22   ;;  %s3315_s21 = sphi %s3445_s21, %s4381_s21  }
  0x1f   : > { %4309 = sst [smem:[#allocation25_spill]] %s3323_s23  ;;  %s2389_s15 = sadd.s32 4294967294, %s3355_s13  }
  0x20   : > { %4310 = sst [smem:[#allocation26_spill]] %s3327_s24  ;;  %p70_p0 = scmp.ne.s32.totalorder %s3331_s25, %s3327_s24 }
  0x21   : > { %4311 = sst [smem:[#allocation27_spill]] %s3339_s27  ;;  %p4253_p1 = scmp.eq.s32.totalorder %s3499_s14, 0 }
  0x22   : > { %4312 = sst [smem:[#allocation28_spill]] %s3343_s28  ;;  %p159_p2 = scmp.ne.s32.totalorder %s3319_s22, %s3315_s21 }
  0x23   : > { %4313 = sst [smem:[#allocation29_spill]] %s3347_s29  ;;  %p3509_p4 = por %p4253_p1, %p70_p0 }
  0x24   : > { %p371_p5 = scmp.eq.s32.totalorder %s2389_s15, 3  ;;  %p3515_p6 = por %p159_p2, %p4253_p1 }
  0x25   : > { %s4314_s16 = scalar_select %p3509_p4, 1, 0 }
  0x26   : > { %s4316_s17 = scalar_select %p3515_p6, 1, 0 }
  0x27   : > { %4315 = sst [smem:[#allocation30_spill]] %s4314_s16  ;;  %p2390_p7 = scmp.ge.s32.totalorder %s3355_s13, 1 }
  0x28   : > { %4317 = sst [smem:[#allocation31_spill]] %s4316_s17  ;;  %p3520_p8 = por %p371_p5, %p70_p0 }
  0x29   : > { %p378_p9 = scmp.lt.s32.totalorder %s3355_s13, 5  ;;  %s3357_s20 = smov [#allocation6]  }
  0x2a   : > { %s4318_s18 = scalar_select %p3520_p8, 1, 0 }
  0x2b   : > { %p3525_p10 = pnand %p2390_p7, %p378_p9  ;;  %s390_s21 = sshll.u32 %s3357_s20, 4  ;;  %s391_s21 = int_to_ptr.vmem [resolvable:$true] %s390_s21 }
  0x2c   : > { %4319 = sst [smem:[#allocation32_spill]] %s4318_s18  ;;  %s47_s24 = sadd.s32 1, %s3347_s29 }
  0x2d   : > { %s4320_s19 = scalar_select %p3525_p10, 1, 0 }
  0x2e   : > { %p2701_p11 = pneg %p3525_p10  ;;  %s4323_s1 = sld [smem:[#allocation40_spill]] }
  0x2f   : > { %4321 = sst [smem:[#allocation33_spill]] %s4320_s19 }
  0x30   : > { %p3533_p12 = pnand %p2701_p11, %p4253_p1 }
  0x32   : > { %s4322_s15 = scalar_select %p3533_p12, 1, 0 }
  0x33   : > { %p4271_p0 = pneg %p3533_p12 }
  0x34   : > { %s2981_s28 = scalar_lea.hbm %s4323_s1, 256 }
  0x35   : > { %p2982_p13 = scmp.ne.s32.totalorder %s4323_s1, %s2981_s28  ;;  %p2988_p7 = scmp.lt.u32.totalorder %s2981_s28, %s4323_s1 }
  0x37   : > { %p2984_p2 = pnand %p4271_p0, %p2982_p13 }
  0x39   : > { %p2985_p5 = pneg %p2984_p2 }
  0x3b   : > { %p2990_p9 = pnand %p2988_p7, %p2985_p5 }
  0x3d   : > { %2993 = shalt.err (!%p2990_p9)
}
  0x3e   : > { %s2994_s9 = scalar_lea.vmem %s391_s21, 256  ;;  %p3002_p8 = scmp.lt.s32.totalorder %s391_s21, %s391_s21 }
  0x3f   : > { %p2995_p11 = scmp.ne.s32.totalorder %s391_s21, %s2994_s9  ;;  %p3003_p6 = scmp.lt.s32.totalorder %s2994_s9, %s2994_s9 }
  0x41   : > { %p2997_p1 = pnand %p2995_p11, %p4271_p0  ;;  %p3004_p4 = por %p3003_p6, %p3002_p8 }
  0x43   : > { %p2998_p3 = pneg %p2997_p1 }
  0x45   : > { %p3005_p10 = pnand %p3004_p4, %p2998_p3 }
  0x47   : > { %3008 = shalt.err (!%p3005_p10)
}
  0x48   : > { %s4257_s3 = smov 128   ;;  %s4259_s10 = smov 8  }
  0x49   : > { %2704 = dma.hbm_to_vmem [thread:$0]  (!%p3533_p12), %s4323_s1, 256, %s391_s21, [#allocation7], %s4257_s3, %s4257_s3, %s4259_s10  }
  0x4a   : > { %p3563_p1 = scmp.ge.s32.totalorder %s47_s24, 2  ;;  %p4270_p3 = scmp.eq.s32.totalorder %s3355_s13, 0 }
  0x4b   : > { %s146_s28 = sadd.s32 1, %s3323_s23  ;;  %p153_p4 = scmp.ne.s32.totalorder %s3323_s23, %s3319_s22 }
  0x4c   : > { %s4324_s12 = scalar_select %p3563_p1, 1, 0 }
  0x4d   : > { %s4393_s24 = smov (%p3563_p1, %s47_s24), 0  ;;  %p155_p6 = por %p153_p4, %p4270_p3 }
  0x4e   : > { %4325 = sst [smem:[#allocation34_spill]] %s4393_s24  ;;  %p4269_p8 = scmp.lt.s32.totalorder %s3355_s13, 4 }
  0x4f   : > { %s143_s18 = ssub.s32 %s3347_s29, %s4393_s24  ;;  %s3582_s21 = sand.u32 1, %s3323_s23  }
  0x50   : > { %p144_p10 = scmp.eq.s32.totalorder %s143_s18, 0  ;;  %4326 = sst [smem:[#allocation35_spill]] %s3582_s21 }
  0x51   : > { %s3585_s9 = sshll.u32 %s3347_s29, 11  ;;  %s3591_s3 = sshll.u32 %s3582_s21, 7 }
  0x52   : > { %s3588_s11 = scalar_select %p144_p10, %s3323_s23, %s146_s28  }
  0x53   : > { %4328 = sst [smem:[#allocation37_spill]] %s3591_s3  ;;  %s4329_s4 = sld [smem:[#allocation43_spill]] }
  0x54   : > { %4327 = sst [smem:[#allocation36_spill]] %s3588_s11  ;;  %p3601_p13 = pnand %p4269_p8, %p155_p6 }
  0x55   : > { %s445_s28 = scalar_lea.vmem [#allocation9], %s3591_s3  ;;  %s4331_s24 = sand.u32 1, %s3355_s13  }
  0x56   : > { %s4330_s18 = scalar_select %p3601_p13, 1, 0 }
  0x57   : > { %s452_s20 = sshll.u32 %s445_s28, 4  ;;  %s3610_s11 = scalar_lea.sflag [#allocation10], %s4331_s24  ;;  %s3606_s20 = int_to_ptr.vmem [resolvable:$true] %s452_s20 }
  0x58   : > { %p3616_p5 = pneg %p3601_p13 }
  0x59   : > { %s3597_s27 = scalar_lea.hbm %s4329_s4, %s3585_s9  ;;  %s3014_s28 = scalar_lea.hbm %s4329_s4, 4096 }
  0x5a   : > { %s3009_s1 = scalar_lea.hbm %s3597_s27, 2048  ;;  %p3015_p11 = scmp.lt.u32.totalorder %s3597_s27, %s4329_s4 }
  0x5b   : > { %p3010_p2 = scmp.ne.s32.totalorder %s3597_s27, %s3009_s1  ;;  %p3016_p4 = scmp.lt.u32.totalorder %s3014_s28, %s3009_s1 }
  0x5c   : > { %s4332_s10 = scalar_select %p3616_p5, 1, 0 }
  0x5d   : > { %p3012_p7 = pnand %p3616_p5, %p3010_p2  ;;  %p3017_p6 = por %p3016_p4, %p3015_p11 }
  0x5e   : > { %p3018_p10 = scmp.lt.u32.totalorder %s3009_s1, %s3597_s27 }
  0x5f   : > { %p3013_p9 = pneg %p3012_p7 }
  0x60   : > { %p3019_p8 = por %p3018_p10, %p3017_p6 }
  0x62   : > { %p3020_p3 = pnand %p3019_p8, %p3013_p9 }
  0x64   : > { %3023 = shalt.err (!%p3020_p3)
}
  0x65   : > { %s3024_s24 = scalar_lea.vmem %s3606_s20, 2048  ;;  %s3360_s23 = smov [#allocation9]  }
  0x66   : > { %p3025_p2 = scmp.ne.s32.totalorder %s3606_s20, %s3024_s24  ;;  %s3029_s17 = sshll.u32 %s3360_s23, 4  ;;  %s3030_s17 = int_to_ptr.vmem [resolvable:$false] %s3029_s17 }
  0x67   : > { %s3031_s22 = scalar_lea.vmem %s3030_s17, 4096  ;;  %p3032_p1 = scmp.lt.s32.totalorder %s3606_s20, %s3030_s17 }
  0x68   : > { %p3027_p7 = pnand %p3025_p2, %p3616_p5  ;;  %p3033_p12 = scmp.lt.s32.totalorder %s3031_s22, %s3024_s24 }
  0x6a   : > { %p3028_p0 = pneg %p3027_p7  ;;  %p3034_p11 = por %p3033_p12, %p3032_p1 }
  0x6c   : > { %p3035_p4 = pnand %p3034_p11, %p3028_p0 }
  0x6e   : > { %3038 = shalt.err (!%p3035_p4)
}
  0x6f   : > { %s4333_s16 = smov 8   ;;  %s4334_s1 = smov 128  }
  0x70   : > { %2714 = dma.hbm_to_vmem [thread:$0]  (!%p3601_p13), %s3597_s27, 2048, %s3606_s20, %s3610_s11, %s4334_s1, %s4334_s1, %s4333_s16  }
  0x71   : > { %s2400_s28 = sshll.u32 %s3582_s21, 6  ;;  %s2513_s23 = sshll.u32 %s3347_s29, 10 }
  0x72   : > { %s4335_s5 = sld [smem:[#allocation44_spill]]  ;;  %s466_s4 = scalar_lea.vmem [#allocation11], %s2400_s28 }
  0x73   : > { %s473_s19 = sshll.u32 %s466_s4, 4  ;;  %s4336_s6 = sld [smem:[#allocation45_spill]]  ;;  %s3650_s19 = int_to_ptr.vmem [resolvable:$true] %s473_s19 }
  0x74   : > { %s487_s27 = scalar_lea.vmem [#allocation12], %s2400_s28  ;;  %s3361_s17 = smov [#allocation8]  }
  0x75   : > { %s494_s20 = sshll.u32 %s487_s27, 4  ;;  %s3659_s24 = sshll.u32 %s3361_s17, 4  ;;  %s3657_s20 = int_to_ptr.vmem [resolvable:$true] %s494_s20  ;;  %s404_s24 = int_to_ptr.vmem [resolvable:$true] %s3659_s24 }
  0x76   : > { %s4337_s29 = sand.u32 1, %s3355_s13  }
  0x77   : > { %s3663_s4 = scalar_lea.sflag [#allocation13], %s4337_s29 }
  0x78   : > { %s3648_s22 = scalar_lea.hbm %s4335_s5, %s2513_s23 }
  0x79   : > { %s3655_s3 = scalar_lea.hbm %s4336_s6, %s2513_s23  ;;  %s3044_s23 = scalar_lea.hbm %s4336_s6, 2048 }
  0x7a   : > { %s3039_s21 = scalar_lea.hbm %s3655_s3, 1024  ;;  %p3045_p3 = scmp.lt.u32.totalorder %s3655_s3, %s4336_s6 }
  0x7b   : > { %p3040_p12 = scmp.ne.s32.totalorder %s3655_s3, %s3039_s21  ;;  %p3046_p8 = scmp.lt.u32.totalorder %s3044_s23, %s3039_s21 }
  0x7c   : > { %p3048_p6 = scmp.lt.u32.totalorder %s3039_s21, %s3655_s3 }
  0x7d   : > { %p3042_p0 = pnand %p3040_p12, %p3616_p5  ;;  %p3047_p9 = por %p3046_p8, %p3045_p3 }
  0x7f   : > { %p3043_p1 = pneg %p3042_p0  ;;  %p3049_p10 = por %p3048_p6, %p3047_p9 }
  0x81   : > { %p3050_p2 = pnand %p3049_p10, %p3043_p1 }
  0x83   : > { %3053 = shalt.err (!%p3050_p2)
}
  0x84   : > { %s3054_s29 = scalar_lea.vmem %s3657_s20, 1024  ;;  %s3362_s27 = smov [#allocation12]  }
  0x85   : > { %p3055_p7 = scmp.ne.s32.totalorder %s3657_s20, %s3054_s29  ;;  %s3059_s17 = sshll.u32 %s3362_s27, 4  ;;  %s3060_s17 = int_to_ptr.vmem [resolvable:$false] %s3059_s17 }
  0x86   : > { %s3061_s1 = scalar_lea.vmem %s3060_s17, 2048  ;;  %p3062_p12 = scmp.lt.s32.totalorder %s3657_s20, %s3060_s17 }
  0x87   : > { %p3057_p11 = pnand %p3055_p7, %p3616_p5  ;;  %p3063_p0 = scmp.lt.s32.totalorder %s3061_s1, %s3054_s29 }
  0x89   : > { %p3058_p4 = pneg %p3057_p11  ;;  %p3064_p3 = por %p3063_p0, %p3062_p12 }
  0x8b   : > { %p3065_p8 = pnand %p3064_p3, %p3058_p4 }
  0x8d   : > { %3068 = shalt.err (!%p3065_p8)
}
  0x8e   : > { %s4287_s21 = smov 64   ;;  %s4289_s7 = smov 4  }
  0x8f   : > { %2720 = dma.hbm_to_vmem [thread:$0]  (!%p3601_p13), %s3655_s3, 1024, %s3657_s20, %s3663_s4, %s4287_s21, %s4287_s21, %s4289_s7  }
  0x90   : > { %s4338_s2 = sld [smem:[#allocation41_spill]]  ;;  %p4339_p9 = scmp.ne.s32.totalorder %s4322_s15, 0 }
  0x92   : > { %p4340_p6 = pneg %p4339_p9 }
  0x96   : > { %s3069_s28 = scalar_lea.hbm %s4338_s2, 512 }
  0x97   : > { %p3070_p1 = scmp.ne.s32.totalorder %s4338_s2, %s3069_s28  ;;  %p3076_p7 = scmp.lt.u32.totalorder %s3069_s28, %s4338_s2 }
  0x99   : > { %p3072_p10 = pnand %p3070_p1, %p4340_p6 }
  0x9b   : > { %p3073_p2 = pneg %p3072_p10 }
  0x9d   : > { %p3078_p11 = pnand %p3076_p7, %p3073_p2 }
  0x9f   : > { %3081 = shalt.err (!%p3078_p11)
}
  0xa0   : > { %s3082_s3 = scalar_lea.vmem %s404_s24, 512  ;;  %p4341_p12 = pmov %p4340_p6 }
  0xa1   : > { %p3083_p4 = scmp.ne.s32.totalorder %s404_s24, %s3082_s3  ;;  %p3090_p8 = scmp.lt.s32.totalorder %s404_s24, %s404_s24 }
  0xa2   : > { %p3091_p13 = scmp.lt.s32.totalorder %s3082_s3, %s3082_s3 }
  0xa3   : > { %p3085_p0 = pnand %p3083_p4, %p4341_p12 }
  0xa4   : > { %p3092_p5 = por %p3091_p13, %p3090_p8 }
  0xa5   : > { %p3086_p3 = pneg %p3085_p0 }
  0xa7   : > { %p3093_p1 = pnand %p3092_p5, %p3086_p3 }
  0xa9   : > { %3096 = shalt.err (!%p3093_p1)
}
  0xaa   : > { %2707 = dma.hbm_to_vmem [thread:$0]  (!%p4339_p9), %s4338_s2, 512, %s404_s24, [#allocation7], %s4287_s21, %s4287_s21, %s4289_s7  }
  0xab   : > { %s57_s23 = sadd.s32 1, %s3335_s26  ;;  %s50_s15 = sadd.s32 1, %s3351_s30 }
  0xac   : > { %p64_p13 = scmp.ne.s32.totalorder %s3335_s26, %s3331_s25  ;;  %p4342_p5 = scmp.ne.s32.totalorder %s4324_s12, 0 }
  0xad   : > { %p4343_p6 = scmp.eq.s32.totalorder %s3355_s13, 0  ;;  %p4345_p2 = scmp.eq.s32.totalorder %s3499_s14, 3 }
  0xae   : > { %s4395_s15 = smov (!%p4342_p5, %s50_s15), %s3351_s30  ;;  %s420_s24 = sand.u32 1, %s3335_s26  }
  0xaf   : > { %p3723_p10 = por %p4343_p6, %p64_p13  ;;  %p3729_p7 = por %p4345_p2, %p64_p13 }
  0xb0   : > { %p52_p11 = scmp.ge.s32.totalorder %s4395_s15, 2  ;;  %s2394_s27 = sshll.u32 %s420_s24, 3 }
  0xb1   : > { %s4346_s29 = scalar_select %p3729_p7, 1, 0 }
  0xb2   : > { %s4397_s15 = smov (%p52_p11, %s4395_s15), 0  ;;  %s2511_s12 = sshll.u32 %s3351_s30, 7 }
  0xb3   : > { %4347 = sst [smem:[#allocation38_spill]] %s4397_s15  ;;  %s54_s17 = ssub.s32 %s3351_s30, %s4397_s15 }
  0xb4   : > { %s4348_s0 = sld [smem:[#allocation39_spill]]  ;;  %p55_p9 = scmp.eq.s32.totalorder %s54_s17, 0 }
  0xb5   : > { %s424_s8 = scalar_lea.vmem [#allocation3], %s2394_s27  ;;  %p4349_p4 = scmp.lt.s32.totalorder %s3355_s13, 4 }
  0xb6   : > { %s431_s21 = sshll.u32 %s424_s8, 4  ;;  %s3744_s21 = int_to_ptr.vmem [resolvable:$true] %s431_s21 }
  0xb7   : > { %p3750_p12 = pnand %p4349_p4, %p3723_p10 }
  0xb8   : > { %s3755_s1 = scalar_select %p55_p9, %s3335_s26, %s57_s23  }
  0xb9   : > { %p3099_p3 = pneg %p3750_p12 }
  0xba   : > { %s3742_s20 = scalar_lea.hbm %s4348_s0, %s2511_s12  ;;  %s3757_s12 = scalar_lea.sflag [#allocation4], %s420_s24 }
  0xbb   : > { %s3097_s3 = scalar_lea.hbm %s3742_s20, 128  ;;  %s3102_s17 = scalar_lea.hbm %s4348_s0, 256 }
  0xbc   : > { %p3098_p0 = scmp.ne.s32.totalorder %s3742_s20, %s3097_s3  ;;  %p3103_p13 = scmp.lt.u32.totalorder %s3742_s20, %s4348_s0 }
  0xbd   : > { %p3104_p5 = scmp.lt.u32.totalorder %s3102_s17, %s3097_s3  ;;  %p3106_p10 = scmp.lt.u32.totalorder %s3097_s3, %s3742_s20 }
  0xbe   : > { %p3100_p8 = pnand %p3099_p3, %p3098_p0 }
  0xbf   : > { %p3105_p6 = por %p3104_p5, %p3103_p13 }
  0xc0   : > { %p3101_p1 = pneg %p3100_p8 }
  0xc1   : > { %p3107_p2 = por %p3106_p10, %p3105_p6 }
  0xc3   : > { %p3108_p11 = pnand %p3107_p2, %p3101_p1 }
  0xc5   : > { %3111 = shalt.err (!%p3108_p11)
}
  0xc6   : > { %s3112_s23 = scalar_lea.vmem %s3744_s21, 128  ;;  %s3365_s24 = smov [#allocation3]  }
  0xc7   : > { %p3113_p9 = scmp.ne.s32.totalorder %s3744_s21, %s3112_s23  ;;  %s3117_s28 = sshll.u32 %s3365_s24, 4  ;;  %s3118_s28 = int_to_ptr.vmem [resolvable:$false] %s3117_s28 }
  0xc8   : > { %s3119_s2 = scalar_lea.vmem %s3118_s28, 256  ;;  %p3120_p8 = scmp.lt.s32.totalorder %s3744_s21, %s3118_s28 }
  0xc9   : > { %p3115_p4 = pnand %p3113_p9, %p3099_p3  ;;  %p3121_p13 = scmp.lt.s32.totalorder %s3119_s2, %s3112_s23 }
  0xcb   : > { %p3116_p0 = pneg %p3115_p4  ;;  %p3122_p5 = por %p3121_p13, %p3120_p8 }
  0xcd   : > { %p3123_p6 = pnand %p3122_p5, %p3116_p0 }
  0xcf   : > { %3126 = shalt.err (!%p3123_p6)
}
  0xd0   : > { %s4351_s3 = smov 4   ;;  %s4352_s27 = smov 64  }
  0xd1   : > { %2711 = dma.hbm_to_vmem [thread:$0]  (!%p3750_p12), %s3742_s20, 128, %s3744_s21, %s3757_s12, %s4352_s27, %s4352_s27, %s4351_s3  }
  0xd2   : > { %s3127_s17 = scalar_lea.hbm %s3648_s22, 1024  ;;  %p4353_p1 = scmp.ne.s32.totalorder %s4332_s10, 0 }
  0xd3   : > { %p3128_p3 = scmp.ne.s32.totalorder %s3648_s22, %s3127_s17  ;;  %s3132_s7 = scalar_lea.hbm %s4335_s5, 2048 }
  0xd4   : > { %p3133_p11 = scmp.lt.u32.totalorder %s3648_s22, %s4335_s5  ;;  %p3134_p9 = scmp.lt.u32.totalorder %s3132_s7, %s3127_s17 }
  0xd5   : > { %p3130_p10 = pnand %p3128_p3, %p4353_p1  ;;  %p3136_p0 = scmp.lt.u32.totalorder %s3127_s17, %s3648_s22 }
  0xd6   : > { %p3135_p4 = por %p3134_p9, %p3133_p11 }
  0xd7   : > { %p3131_p2 = pneg %p3130_p10 }
  0xd8   : > { %p3137_p8 = por %p3136_p0, %p3135_p4 }
  0xda   : > { %p3138_p13 = pnand %p3137_p8, %p3131_p2 }
  0xdc   : > { %3141 = shalt.err (!%p3138_p13)
}
  0xdd   : > { %s3142_s21 = scalar_lea.vmem %s3650_s19, 1024  ;;  %s3366_s20 = smov [#allocation11]  }
  0xde   : > { %p3143_p12 = scmp.ne.s32.totalorder %s3650_s19, %s3142_s21  ;;  %s3147_s12 = sshll.u32 %s3366_s20, 4  ;;  %s3148_s12 = int_to_ptr.vmem [resolvable:$false] %s3147_s12 }
  0xdf   : > { %s3149_s2 = scalar_lea.vmem %s3148_s12, 2048  ;;  %p3150_p3 = scmp.lt.s32.totalorder %s3650_s19, %s3148_s12 }
  0xe0   : > { %p3145_p5 = pnand %p3143_p12, %p4353_p1  ;;  %p3151_p10 = scmp.lt.s32.totalorder %s3149_s2, %s3142_s21 }
  0xe2   : > { %p3146_p6 = pneg %p3145_p5  ;;  %p3152_p11 = por %p3151_p10, %p3150_p3 }
  0xe4   : > { %p3153_p9 = pnand %p3152_p11, %p3146_p6 }
  0xe6   : > { %3156 = shalt.err (!%p3153_p9)
}
  0xe7   : > { %p4354_p2 = scmp.ne.s32.totalorder %s4330_s18, 0  ;;  %s4355_s17 = sld [smem:[#allocation37_spill]] }
  0xe8   : > { %s4356_s7 = sld [smem:[#allocation46_spill]] }
  0xe9   : > { %2717 = dma.hbm_to_vmem [thread:$0]  (!%p4354_p2), %s3648_s22, 1024, %s3650_s19, %s3610_s11, %s4352_s27, %s4352_s27, %s4351_s3  }
  0xed   : > { %s508_s28 = scalar_lea.vmem [#allocation14], %s4355_s17 }
  0xee   : > { %s3817_s24 = scalar_lea.hbm %s4356_s7, %s3585_s9  ;;  %s515_s21 = sshll.u32 %s508_s28, 4  ;;  %s3820_s21 = int_to_ptr.vmem [resolvable:$true] %s515_s21 }
  0xef   : > { %s3157_s20 = scalar_lea.hbm %s3817_s24, 2048  ;;  %s3162_s11 = scalar_lea.hbm %s4356_s7, 4096 }
  0xf0   : > { %p3158_p4 = scmp.ne.s32.totalorder %s3817_s24, %s3157_s20  ;;  %p3163_p13 = scmp.lt.u32.totalorder %s3817_s24, %s4356_s7 }
  0xf1   : > { %p3164_p12 = scmp.lt.u32.totalorder %s3162_s11, %s3157_s20  ;;  %p3166_p6 = scmp.lt.u32.totalorder %s3157_s20, %s3817_s24 }
  0xf2   : > { %p3160_p0 = pnand %p3158_p4, %p4353_p1 }
  0xf3   : > { %p3165_p5 = por %p3164_p12, %p3163_p13 }
  0xf4   : > { %p3161_p8 = pneg %p3160_p0 }
  0xf5   : > { %p3167_p3 = por %p3166_p6, %p3165_p5 }
  0xf7   : > { %p3168_p10 = pnand %p3167_p3, %p3161_p8 }
  0xf9   : > { %3171 = shalt.err (!%p3168_p10)
}
  0xfa   : > { %s3172_s8 = scalar_lea.vmem %s3820_s21, 2048  ;;  %s3367_s23 = smov [#allocation14]  }
  0xfb   : > { %p3173_p11 = scmp.ne.s32.totalorder %s3820_s21, %s3172_s8  ;;  %s3177_s28 = sshll.u32 %s3367_s23, 4  ;;  %s3178_s28 = int_to_ptr.vmem [resolvable:$false] %s3177_s28 }
  0xfc   : > { %s3179_s12 = scalar_lea.vmem %s3178_s28, 4096  ;;  %p3180_p0 = scmp.lt.s32.totalorder %s3820_s21, %s3178_s28 }
  0xfd   : > { %p3175_p9 = pnand %p3173_p11, %p4353_p1  ;;  %p3181_p7 = scmp.lt.s32.totalorder %s3179_s12, %s3172_s8 }
  0xff   : > { %p3176_p4 = pneg %p3175_p9  ;;  %p3182_p13 = por %p3181_p7, %p3180_p0 }
 0x101   : > { %p3183_p12 = pnand %p3182_p13, %p3176_p4 }
 0x103   : > { %3186 = shalt.err (!%p3183_p12)
}
 0x104   : > { %s4357_s20 = smov 128   ;;  %s4358_s19 = sld [smem:[#allocation35_spill]] }
 0x105   : > { %2723 = dma.hbm_to_vmem [thread:$0]  (!%p4354_p2), %s3817_s24, 2048, %s3820_s21, %s3663_s4, %s4357_s20, %s4357_s20, %s4333_s16  }
 0x106   : > { %s4359_s2 = sld [smem:[#allocation47_spill]]  ;;  %s529_s23 = scalar_lea.vmem [#allocation15], %s4355_s17 }
 0x107   : > { %s536_s28 = sshll.u32 %s529_s23, 4  ;;  %s3854_s28 = int_to_ptr.vmem [resolvable:$true] %s536_s28 }
 0x10a   : > { %s526_s12 = scalar_lea.sflag [#allocation16], %s4358_s19 }
 0x10c   : > { %s3851_s8 = scalar_lea.hbm %s4359_s2, %s3585_s9  ;;  %s3192_s24 = scalar_lea.hbm %s4359_s2, 4096 }
 0x10d   : > { %s3187_s0 = scalar_lea.hbm %s3851_s8, 2048  ;;  %p3193_p6 = scmp.lt.u32.totalorder %s3851_s8, %s4359_s2 }
 0x10e   : > { %p3188_p7 = scmp.ne.s32.totalorder %s3851_s8, %s3187_s0  ;;  %p3194_p3 = scmp.lt.u32.totalorder %s3192_s24, %s3187_s0 }
 0x10f   : > { %p3196_p11 = scmp.lt.u32.totalorder %s3187_s0, %s3851_s8 }
 0x110   : > { %p3190_p8 = pnand %p3188_p7, %p4353_p1  ;;  %p3195_p10 = por %p3194_p3, %p3193_p6 }
 0x112   : > { %p3191_p5 = pneg %p3190_p8  ;;  %p3197_p9 = por %p3196_p11, %p3195_p10 }
 0x114   : > { %p3198_p4 = pnand %p3197_p9, %p3191_p5 }
 0x116   : > { %3201 = shalt.err (!%p3198_p4)
}
 0x117   : > { %s3202_s17 = scalar_lea.vmem %s3854_s28, 2048  ;;  %s3368_s20 = smov [#allocation15]  }
 0x118   : > { %p3203_p0 = scmp.ne.s32.totalorder %s3854_s28, %s3202_s17  ;;  %s3207_s11 = sshll.u32 %s3368_s20, 4  ;;  %s3208_s11 = int_to_ptr.vmem [resolvable:$false] %s3207_s11 }
 0x119   : > { %s3209_s22 = scalar_lea.vmem %s3208_s11, 4096  ;;  %p3210_p7 = scmp.lt.s32.totalorder %s3854_s28, %s3208_s11 }
 0x11a   : > { %p3205_p13 = pnand %p3203_p0, %p4353_p1  ;;  %p3211_p8 = scmp.lt.s32.totalorder %s3209_s22, %s3202_s17 }
 0x11c   : > { %p3206_p12 = pneg %p3205_p13  ;;  %p3212_p6 = por %p3211_p8, %p3210_p7 }
 0x11e   : > { %p3213_p3 = pnand %p3212_p6, %p3206_p12 }
 0x120   : > { %3216 = shalt.err (!%p3213_p3)
}
 0x121   : > { %2726 = dma.hbm_to_vmem [thread:$0]  (!%p4354_p2), %s3851_s8, 2048, %s3854_s28, %s526_s12, %s4352_s27, %s4352_s27, %s4351_s3  }
 0x122   : > { %s4360_s0 = sld [smem:[#allocation33_spill]] }
 0x128   : > { %p4361_p1 = scmp.ne.s32.totalorder %s4360_s0, 0 }
 0x129   : > { %s4362_s10 = sld [smem:[#allocation30_spill]] (!%p4361_p1)  ;;  %s3886_s23 = sand.u32 (!%p4361_p1), 1, %s3331_s25  }
 0x12a   : > { %569 = sbr.rel (%p4361_p1) target bundleno = 3581 (0xdfd), region = 68  ;;  %s2413_s16 = sshll.u32 (!%p4361_p1), %s3886_s23, 3 }
 0x12b   : > { %s572_s4 = scalar_lea.sflag (!%p4361_p1), [#allocation4], %s3886_s23  ;;  %s3890_s18 = scalar_lea.vmem (!%p4361_p1), [#allocation3], %s2413_s16 }
 0x12f   : > { %p4363_p5 = scmp.ne.s32.totalorder (!%p4361_p1), %s4362_s10, 0 }
 0x131   : > { %3290 = dma.done.wait (%p4363_p5), %s572_s4, 128  }
 0x132   : > { %3292 = vsyncadd (%p4363_p5), %s572_s4, 4294967168  ;;  %p4364_p2 = scmp.eq.s32.totalorder %s3499_s14, 0 }
 0x134   : > { %3294 = dma.done.wait (%p4364_p2), [#allocation7], 768   ;;  %p4365_p10 = pmov %p4364_p2 }
 0x135   : > { %s4366_s3 = sld [smem:[#allocation24_spill]]  ;;  %s4367_s27 = sld [smem:[#allocation31_spill]] }
 0x136   : > { %3296 = vsyncadd (%p4365_p10), [#allocation7], 4294966528  ;;  %s588_s19 = sand.u32 1, %s3499_s14  }
 0x137   : > { %s589_s12 = scalar_lea.sflag [#allocation10], %s588_s19 }
 0x13b   : > { %s590_s8 = sand.u32 1, %s4366_s3   ;;  %p4368_p11 = scmp.ne.s32.totalorder %s4367_s27, 0 }
 0x13c   : > { %s2416_s28 = sshll.u32 %s590_s8, 7 }
 0x13d   : > { %s3902_s24 = scalar_lea.vmem [#allocation9], %s2416_s28 }
 0x13e   : > { %3298 = dma.done.wait (%p4368_p11), %s589_s12, 3072  }
 0x13f   : > { %3300 = vsyncadd (%p4368_p11), %s589_s12, 4294964224  ;;  %s2417_s9 = sshll.u32 %s590_s8, 6  ;;  %s607_s17 = scalar_lea.sflag [#allocation13], %s588_s19 }
 0x140   : > { %s3908_s21 = scalar_lea.vmem [#allocation11], %s2417_s9  ;;  %s3910_s20 = scalar_lea.vmem [#allocation12], %s2417_s9 }
 0x141   : > { %3302 = dma.done.wait (%p4368_p11), %s607_s17, 3072  }
 0x142   : > { %3304 = vsyncadd (%p4368_p11), %s607_s17, 4294964224  ;;  %s3916_s14 = scalar_lea.vmem [#allocation14], %s2416_s28  ;;  %s625_s11 = scalar_lea.sflag [#allocation16], %s590_s8 }
 0x143   : > { %s3918_s22 = scalar_lea.vmem [#allocation15], %s2416_s28 }
 0x144   : > { %3306 = dma.done.wait (%p4368_p11), %s625_s11, 2048  }
 0x145   : > { %3308 = vsyncadd (%p4368_p11), %s625_s11, 4294965248  ;;  %s4369_s0 = sld [smem:[#allocation27_spill]]  ;;  %s2421_s10 = sshll.u32 %s3886_s23, 4 }
 0x146   : > { %s4370_s9 = sld [smem:[#allocation48_spill]]  ;;  %s4371_s2 = sld [smem:[#allocation49_spill]] }
 0x147   : > { %s4372_s6 = sld [smem:[#allocation50_spill]]  ;;  %s3942_s15 = scalar_lea.vmem [#allocation17], %s2421_s10 }
 0x14b   : > { %p706_p9 = scmp.lt.s32.totalorder %s4369_s0, 1  ;;  %p2425_p4 = scmp.ne.s32.totalorder %s4369_s0, 0 }
 0x14c   : > { %v2841_v0 = vld [vmem:[#allocation8] sm:$0xff] (!%p2425_p4)   ;;  %v3369_v1 = vmov (!%p2425_p4), 0.0   ;;  %v2842_v2 = vld [vmem:[#allocation8 + $0x8] sm:$0xff] (!%p2425_p4)   ;;  %vm3370_vm0 = vmmov (!%p2425_p4), 0   ;;  %v2843_v3 = vld [vmem:[#allocation8 + $0x10] sm:$0xff] (!%p2425_p4)   ;;  %vm769_vm1 = vcmask (!%p2425_p4), 523264  }
 0x14d   : > { %s707_s16 = scalar_select %p706_p9, %s4369_s0, 1 }
 0x14e   : > { %722 = sbr.rel (%p2425_p4) target bundleno = 567 (0x237), region = 104  ;;  %2579 = vmatprep.subr.bf16.mxu0 (!%p2425_p4), %v3369_v1  ;;  %2587 = vmatprep.mubr.msk.bf16.mxu0 (!%p2425_p4), %vm3370_vm0, %v3369_v1  ;;  %v2844_v4 = vld [vmem:[#allocation8 + $0x18] sm:$0xff] (!%p2425_p4)   ;;  %v2845_v5 = vld [vmem:[%s3890_s18] sm:$0xff] (!%p2425_p4)   ;;  %s4373_s0 = sld [smem:[#allocation42_spill]] (!%p2425_p4) }
 0x14f   : > { %s2422_s4 = sshll.u32 %s707_s16, 1  ;;  %s2424_s3 = sshll.u32 %s707_s16, 3  ;;  %2580 = vmatpush3.bf16.msra.mxu0 (!%p2425_p4), %v2841_v0 }
 0x150   : > { %s3930_s17 = scalar_lea.vmem %s4370_s9, %s2422_s4  ;;  %s3935_s5 = scalar_lea.vmem %s4371_s2, %s2422_s4  ;;  %2581 = vmatprep.subr.bf16.mxu0 (!%p2425_p4), %v3369_v1 }
 0x151   : > { %s3940_s7 = scalar_lea.vmem %s4372_s6, %s2424_s3 }
 0x153   : > { %2582 = vmatpush3.bf16.msra.mxu0 (!%p2425_p4), %v2842_v2 }
 0x154   : > { %2583 = vmatprep.subr.bf16.mxu0 (!%p2425_p4), %v3369_v1  ;;  %v2426_v6 = vld [vmem:[%s4373_s0] ss:$0 sm:$0xff] (!%p2425_p4) }
 0x157   : > { %2584 = vmatpush3.bf16.msra.mxu0 %v2843_v3 }
 0x158   : > { %2585 = vmatprep.subr.bf16.mxu0 %v3369_v1 }
 0x15b   : > { %2586 = vmatpush3.bf16.msra.mxu0 %v2844_v4 }
 0x15e   : > { %2588 = vmatmul.mubr.msk.bf16.vlgmr.msra.gmra.mrb[0].mxu0 %vm769_vm1, %v2845_v5 }
 0x231   : > { %v807_v7 = vpop.f32.mrb[0].mxu0 }
 0x232   : > { %v808_v8 = vadd.f32 %v2426_v6, %v807_v7  ;;  %v2589_v9 = vpop.f32.mrb[1].mxu0 }
 0x233   : > { %v810_v10 = vpop.f32.mrb[2].mxu0 }
 0x234   : > { %814 = vst [vmem:[#allocation2] sm:$0xff] %v808_v8  ;;  %v811_v11 = vadd.f32 %v2426_v6, %v810_v10  ;;  %v2590_v12 = vpop.f32.mrb[3].mxu0 }
 0x236   : > { %815 = vst [vmem:[#allocation2 + $0x8] sm:$0xff] %v811_v11 }
 0x237 PF: > { %v2861_v13 = vld [vmem:[%s3902_s24 + $0x4] ss:$8 sps:$4 sm:$0xff]   ;;  %v2863_v14 = vld [vmem:[%s3902_s24] ss:$8 sps:$4 sm:$0xff]   ;;  %v3371_v15 = vmov 0   ;;  %v3372_v16 = vmov 0.0   ;;  %v842_v47 = vlaneseq }
 0x238   : > { %964 = vmatprep.mubr.bf16.mxu0 %v3371_v15  ;;  %2591 = vmatprep.subr.bf16.mxu1 %v3372_v16  ;;  %v2864_v17 = vld [vmem:[%s3902_s24 + $0x14] ss:$8 sps:$4 sm:$0xff]   ;;  %v2866_v18 = vld [vmem:[%s3902_s24 + $0x10] ss:$8 sps:$4 sm:$0xff]   ;;  %v2867_v19 = vld [vmem:[%s3902_s24 + $0x24] ss:$8 sps:$4 sm:$0xff]  }
 0x239   : > { %932 = vmatprep.subr.bf16.mxu0 %v2861_v13  ;;  %v2869_v20 = vld [vmem:[%s3902_s24 + $0x20] ss:$8 sps:$4 sm:$0xff]   ;;  %v2870_v21 = vld [vmem:[%s3902_s24 + $0x34] ss:$8 sps:$4 sm:$0xff]   ;;  %v2872_v22 = vld [vmem:[%s3902_s24 + $0x30] ss:$8 sps:$4 sm:$0xff]  }
 0x23a   : > { %933 = vmatpush1.bf16.msra.mxu0 %v2863_v14  ;;  %v2873_v23 = vld [vmem:[%s3902_s24 + $0x44] ss:$8 sps:$4 sm:$0xff]   ;;  %v2875_v26 = vld [vmem:[%s3902_s24 + $0x40] ss:$8 sps:$4 sm:$0xff]   ;;  %v2876_v27 = vld [vmem:[%s3902_s24 + $0x54] ss:$8 sps:$4 sm:$0xff]  }
 0x23b   : > { %934 = vmatprep.subr.bf16.mxu0 %v2864_v17  ;;  %v2885_v24 = vld [vmem:[%s3908_s21] sm:$0xff]   ;;  %v2886_v25 = vld [vmem:[%s3908_s21 + $0x8] sm:$0xff]   ;;  %v2878_v28 = vld [vmem:[%s3902_s24 + $0x50] ss:$8 sps:$4 sm:$0xff]   ;;  %vm3373_vm2 = vmmov 0   ;;  %v3998_v48 = vshrl.u32 %v842_v47, 7 }
 0x23c   : > { %2592 = vmatpush3.bf16.msra.mxu1 %v2885_v24  ;;  %v2887_v29 = vld [vmem:[%s3908_s21 + $0x10] sm:$0xff]   ;;  %v2879_v30 = vld [vmem:[%s3902_s24 + $0x64] ss:$8 sps:$4 sm:$0xff]   ;;  %v2888_v31 = vld [vmem:[%s3908_s21 + $0x18] sm:$0xff]   ;;  %2607 = vmatprep.mubr.msk.bf16.mxu1 %vm3373_vm2, %v3372_v16  ;;  %vm1090_vm3 = vcmask 261120   ;;  %vm1138_vm4 = vcmask 130048  }
 0x23d   : > { %2593 = vmatprep.subr.bf16.mxu1 %v3372_v16  ;;  %v2881_v32 = vld [vmem:[%s3902_s24 + $0x60] ss:$8 sps:$4 sm:$0xff]   ;;  %v3971_v33 = vld [vmem:[#allocation2] sm:$0xff]  ;;  %v3973_v34 = vld [vmem:[#allocation2 + $0x8] sm:$0xff]  ;;  %v4001_v49 = vsub.s32 0, %v3998_v48  ;;  %v4005_v51 = vsub.s32 1, %v3998_v48 }
 0x23e   : > { %935 = vmatpush1.bf16.msra.mxu0 %v2866_v18  ;;  %v818_v35 = vld [vmem:[#allocation6] sm:$0xff]  ;;  %v819_v36 = vld [vmem:[#allocation6 + $0x8] sm:$0xff]  ;;  %v2889_v38 = vld [vmem:[%s3908_s21 + $0x20] sm:$0xff]   ;;  %v975_v46 = vpack.c.bf16 %v3973_v34, %v3971_v33  ;;  %s3375_s18 = smov 32   ;;  %vm1598_vm5 = vcmask 523264   ;;  %vm1601_vm6 = vcmask 785408  }
 0x23f   : > { %936 = vmatprep.subr.bf16.mxu0 %v2867_v19  ;;  %v2882_v37 = vld [vmem:[%s3902_s24 + $0x74] ss:$8 sps:$4 sm:$0xff]   ;;  %v2884_v39 = vld [vmem:[%s3902_s24 + $0x70] ss:$8 sps:$4 sm:$0xff]   ;;  %v821_v40 = vadd.f32 %v818_v35, %v3971_v33  ;;  %v822_v41 = vadd.f32 %v819_v36, %v3973_v34  ;;  %v2890_v42 = vld [vmem:[%s3908_s21 + $0x28] sm:$0xff]   ;;  %s3376_s24 = smov 64  }
 0x240   : > { %2594 = vmatpush3.bf16.msra.mxu1 %v2886_v25  ;;  %v2891_v44 = vld [vmem:[%s3908_s21 + $0x30] sm:$0xff]   ;;  %v2892_v45 = vld [vmem:[%s3908_s21 + $0x38] sm:$0xff]  }
 0x241   : > { %2595 = vmatprep.subr.bf16.mxu1 %v3372_v16  ;;  %v823_v43 = vpack.c.bf16 %v822_v41, %v821_v40  ;;  %v840_v50 = vld [vmem:[%s3930_s17] sm:$0x3] }
 0x242   : > { %937 = vmatpush1.bf16.msra.mxu0 %v2869_v20  ;;  %v845_v52 = vrot.slane %v840_v50, %v4001_v49  ;;  %v849_v54 = vrot.slane %v840_v50, %v4005_v51  ;;  %v4015_v3 = vld [vmem:[%s3940_s7] sm:$0xff]  ;;  %s3374_s7 = smov 96  }
 0x243   : > { %938 = vmatprep.subr.bf16.mxu0 %v2870_v21  ;;  %v995_v4 = vrot.slane %v4015_v3, %v4001_v49 }
 0x244   : > { %2596 = vmatpush3.bf16.msra.mxu1 %v2887_v29 }
 0x245   : > { %2597 = vmatprep.subr.bf16.mxu1 %v3372_v16 }
 0x246   : > { %939 = vmatpush1.bf16.msra.mxu0 %v2872_v22 }
 0x247   : > { %940 = vmatprep.subr.bf16.mxu0 %v2873_v23 }
 0x248   : > { %2598 = vmatpush3.bf16.msra.mxu1 %v2888_v31 }
 0x249   : > { %2599 = vmatprep.subr.bf16.mxu1 %v3372_v16 }
 0x24a   : > { %941 = vmatpush1.bf16.msra.mxu0 %v2875_v26 }
 0x24b   : > { %942 = vmatprep.subr.bf16.mxu0 %v2876_v27 }
 0x24c   : > { %2600 = vmatpush3.bf16.msra.mxu1 %v2889_v38 }
 0x24d   : > { %2601 = vmatprep.subr.bf16.mxu1 %v3372_v16 }
 0x24e   : > { %943 = vmatpush1.bf16.msra.mxu0 %v2878_v28 }
 0x24f   : > { %944 = vmatprep.subr.bf16.mxu0 %v2879_v30 }
 0x250   : > { %2602 = vmatpush3.bf16.msra.mxu1 %v2890_v42 }
 0x251   : > { %2603 = vmatprep.subr.bf16.mxu1 %v3372_v16 }
 0x252   : > { %945 = vmatpush1.bf16.msra.mxu0 %v2881_v32 }
 0x253   : > { %946 = vmatprep.subr.bf16.mxu0 %v2882_v37 }
 0x254   : > { %2604 = vmatpush3.bf16.msra.mxu1 %v2891_v44 }
 0x255   : > { %2605 = vmatprep.subr.bf16.mxu1 %v3372_v16 }
 0x256   : > { %947 = vmatpush1.bf16.msra.mxu0 %v2884_v39 }
 0x257   : > { %2635 = vmatprep.subr.bf16.mxu0 %v3372_v16 }
 0x258   : > { %2606 = vmatpush3.bf16.msra.mxu1 %v2892_v45 }
 0x259   : > { %965 = vmatmul.mubr.bf16.vlgmr.msra.gmra.mrb[0].mxu0 %v823_v43  ;;  %2611 = vmatprep.subr.bf16.mxu1 %v3372_v16 }
 0x25a   : > { %2637 = vmatprep.mubr.msk.bf16.mxu0 %vm3373_vm2, %v3372_v16 }
 0x25b   : > { %2608 = vmatmul.mubr.bf16.vlgmr.msra.gmra.mrb[0].mxu1 %v975_v46 }
 0x25c   : > { %2613 = vmatprep.mubr.msk.bf16.mxu1 %vm3373_vm2, %v3372_v16 }
 0x32c   : > { %v966_v53 = vpop.f32.mrb[0].mxu0 }
 0x32d   : > { %v967_v55 = vadd.f32 %v966_v53, %v845_v52  ;;  %v968_v56 = vpop.f32.mrb[1].mxu0 }
 0x32e   : > { %v970_v57 = vpop.f32.mrb[2].mxu0  ;;  %v969_v60 = vadd.f32 %v968_v56, %v849_v54  ;;  %v1078_v5 = vpop.f32.mrb[0].mxu1 }
 0x32f   : > { %v971_v58 = vadd.f32 %v970_v57, %v845_v52  ;;  %v972_v59 = vpop.f32.mrb[3].mxu0  ;;  %v1085_v62 = vmul.f32 0.17677669, %v967_v55  ;;  %v1079_v6 = vadd.f32 %v1078_v5, %v995_v4  ;;  %v2609_v7 = vpop.f32.mrb[1].mxu1 }
 0x330   : > { %v973_v61 = vadd.f32 %v972_v59, %v849_v54  ;;  %v1081_v8 = vpop.f32.mrb[2].mxu1 }
 0x331   : > { %v1086_v63 = vmul.f32 0.17677669, %v971_v58  ;;  %v1082_v9 = vadd.f32 %v1081_v8, %v995_v4  ;;  %v2610_v10 = vpop.f32.mrb[3].mxu1 }
 0x332   : > { %v1088_v0 = vpack.c.bf16 %v973_v61, %v969_v60 }
 0x333   : > { %v1087_v1 = vpack.c.bf16 %v1086_v63, %v1085_v62  ;;  %v4019_v11 = vpack.c.bf16 %v1082_v9, %v1079_v6 }
 0x334   : > { %v1095_v2 = vsel %vm1090_vm3, %v1088_v0, 0 }
 0x335   : > { %2612 = vmatpush3.bf16.xpose.msra.mxu1 %v1095_v2 }
 0x336   : > { %2617 = vmatprep.subr.bf16.mxu1 %v3372_v16 }
 0x33c   : > { %2614 = vmatmul.mubr.msk.bf16.vlgmr.msra.gmra.mrb[4].mxu1 %vm1090_vm3, %v1087_v1 }
 0x33d   : > { %2619 = vmatprep.mubr.msk.bf16.mxu1 %vm3373_vm2, %v3372_v16  ;;  %2618 = vmatpush3.bf16.msra.mxu1 %v4019_v11 }
 0x33e   : > { %2623 = vmatprep.subr.bf16.mxu1 %v3372_v16 }
 0x40f   : > { %v1131_v12 = vpop.f32.mrb[4].mxu1 }
 0x410   : > { %v2615_v13 = vpop.f32.mrb[5].mxu1  ;;  %v1139_v14 = vsel %vm1138_vm4, %v1131_v12, -inf }
 0x411   : > { %1140 = vmax.xlane.f32.xlu0 %v1139_v14  ;;  %v1134_v17 = vpop.f32.mrb[6].mxu1 }
 0x412   : > { %v2616_v18 = vpop.f32.mrb[7].mxu1  ;;  %v1142_v19 = vsel %vm1138_vm4, %v1134_v17, -inf }
 0x415   : > { %1143 = vmax.xlane.f32.xlu0 %v1142_v19 }
 0x42b   : > { %1210 = vrot.lane.b32.xlu0 %v1088_v0, %s3374_s7 }
 0x42f   : > { %1453 = vrot.lane.b32.xlu0 %v1088_v0, %s3375_s18 }
 0x49e   : > { %v1141_v20 = vpop.xlane.xlu0 %1140 }
 0x49f   : > { %v1145_v21 = vsub.f32 %v1131_v12, %v1141_v20 }
 0x4a1   : > { %v1147_v22 = vmul.f32 1.442695, %v1145_v21 }
 0x4a2   : > { %v1144_v23 = vpop.xlane.xlu0 %1143 }
 0x4a3   : > { %2941 = vpow2.f32 %v1147_v22  ;;  %v1146_v24 = vsub.f32 %v1134_v17, %v1144_v23 }
 0x4a5   : > { %v1149_v25 = vmul.f32 1.442695, %v1146_v24 }
 0x4a6   : > { %v1211_v35 = vpop.permute.xlu0 %1210 }
 0x4a7   : > { %2943 = vpow2.f32 %v1149_v25  ;;  %v1216_v44 = vsel %vm1090_vm3, %v1211_v35, 0 }
 0x4aa   : > { %v1454_v42 = vpop.permute.xlu0 %1453 }
 0x4ab   : > { %v1459_v46 = vsel %vm1090_vm3, %v1454_v42, 0 }
 0x4ad   : > { %v2942_v26 = vpop.eup %2941 }
 0x4ae   : > { %v1151_v27 = vsel %vm1138_vm4, %v2942_v26, 0.0 }
 0x4af   : > { %1152 = vadd.xlane.f32.xlu1 %v1151_v27 }
 0x4b1   : > { %v2944_v28 = vpop.eup %2943 }
 0x4b2   : > { %v1154_v29 = vsel %vm1138_vm4, %v2944_v28, 0.0 }
 0x4b3   : > { %1155 = vadd.xlane.f32.xlu1 %v1154_v29 }
 0x4c4   : > { %1207 = vrot.lane.b32.xlu1 %v1087_v1, %s3374_s7 }
 0x4c8   : > { %1332 = vrot.lane.b32.xlu1 %v1088_v0, %s3376_s24 }
 0x4cc   : > { %1330 = vrot.lane.b32.xlu1 %v1087_v1, %s3376_s24 }
 0x4d0   : > { %1451 = vrot.lane.b32.xlu1 %v1087_v1, %s3375_s18 }
 0x53c   : > { %v1153_v30 = vpop.xlane.xlu1 %1152 }
 0x53d   : > { %2945 = vrcp.f32 %v1153_v30 }
 0x540   : > { %v1156_v31 = vpop.xlane.xlu1 %1155 }
 0x541   : > { %2947 = vrcp.f32 %v1156_v31 }
 0x544   : > { %v1208_v32 = vpop.permute.xlu1 %1207 }
 0x547   : > { %v2946_v37 = vpop.eup %2945 }
 0x548   : > { %v1333_v36 = vpop.permute.xlu1 %1332  ;;  %v1159_v40 = vmul.f32 %v2946_v37, %v2942_v26 }
 0x549   : > { %v1338_v38 = vsel %vm1090_vm3, %v1333_v36, 0 }
 0x54a   : > { %2636 = vmatpush3.bf16.xpose.msra.mxu0 %v1338_v38 }
 0x54b   : > { %v2948_v39 = vpop.eup %2947  ;;  %2647 = vmatprep.subr.bf16.mxu0 %v3372_v16 }
 0x54c   : > { %v1160_v41 = vmul.f32 %v2948_v39, %v2944_v28  ;;  %v1331_v45 = vpop.permute.xlu1 %1330 }
 0x54e   : > { %v1161_v43 = vpack.c.bf16 %v1160_v41, %v1159_v40 }
 0x550   : > { %2620 = vmatmul.mubr.msk.bf16.vlgmr.msra.gmra.mrb[8].mxu1 %vm1138_vm4, %v1161_v43  ;;  %v1452_v47 = vpop.permute.xlu1 %1451 }
 0x551   : > { %2624 = vmatpush3.bf16.xpose.msra.mxu1 %v1216_v44  ;;  %2638 = vmatmul.mubr.msk.bf16.vlgmr.msra.gmra.mrb[4].mxu0 %vm1090_vm3, %v1331_v45 }
 0x552   : > { %2648 = vmatpush3.bf16.xpose.msra.mxu0 %v1459_v46  ;;  %2625 = vmatprep.mubr.msk.bf16.mxu1 %vm3373_vm2, %v3372_v16 }
 0x553   : > { %2649 = vmatprep.mubr.msk.bf16.mxu0 %vm3373_vm2, %v3372_v16  ;;  %2629 = vmatprep.subr.bf16.mxu1 %v3372_v16 }
 0x554   : > { %2659 = vmatprep.subr.bf16.mxu0 %v3372_v16 }
 0x558   : > { %2626 = vmatmul.mubr.msk.bf16.vlgmr.msra.gmra.mrb[12].mxu1 %vm1090_vm3, %v1208_v32 }
 0x559   : > { %2650 = vmatmul.mubr.msk.bf16.vlgmr.msra.gmra.mrb[8].mxu0 %vm1090_vm3, %v1452_v47  ;;  %2631 = vmatprep.mubr.msk.bf16.mxu1 %vm3373_vm2, %v3372_v16 }
 0x55a   : > { %2675 = vmatprep.mubr.msk.bf16.mxu0 %vm3373_vm2, %v3372_v16 }
 0x623   : > { %v4051_v50 = vpop.f32.mrb[8].mxu1 }
 0x624   : > { %v2621_v52 = vpop.f32.mrb[9].mxu1  ;;  %v1374_v53 = vpop.f32.mrb[4].mxu0 }
 0x625   : > { %v4053_v54 = vpop.f32.mrb[10].mxu1  ;;  %v2639_v55 = vpop.f32.mrb[5].mxu0  ;;  %v1381_v6 = vsel %vm1138_vm4, %v1374_v53, -inf }
 0x626   : > { %v2622_v56 = vpop.f32.mrb[11].mxu1  ;;  %v1377_v57 = vpop.f32.mrb[6].mxu0 }
 0x627   : > { %v2640_v58 = vpop.f32.mrb[7].mxu0  ;;  %v1384_v8 = vsel %vm1138_vm4, %v1377_v57, -inf }
 0x62b   : > { %v1252_v59 = vpop.f32.mrb[12].mxu1 }
 0x62c   : > { %v2627_v60 = vpop.f32.mrb[13].mxu1  ;;  %v1495_v61 = vpop.f32.mrb[8].mxu0  ;;  %v1259_v62 = vsel %vm1138_vm4, %v1252_v59, -inf }
 0x62d   : > { %v2651_v63 = vpop.f32.mrb[9].mxu0  ;;  %1260 = vmax.xlane.f32.xlu0 %v1259_v62  ;;  %v1255_v0 = vpop.f32.mrb[14].mxu1  ;;  %v1502_v9 = vsel %vm1138_vm4, %v1495_v61, -inf }
 0x62e   : > { %v2628_v1 = vpop.f32.mrb[15].mxu1  ;;  %v1498_v2 = vpop.f32.mrb[10].mxu0  ;;  %v1262_v4 = vsel %vm1138_vm4, %v1255_v0, -inf }
 0x62f   : > { %v2652_v5 = vpop.f32.mrb[11].mxu0  ;;  %1263 = vmax.xlane.f32.xlu1 %v1262_v4  ;;  %v1505_v7 = vsel %vm1138_vm4, %v1498_v2, -inf }
 0x631   : > { %1382 = vmax.xlane.f32.xlu0 %v1381_v6 }
 0x633   : > { %1506 = vmax.xlane.f32.xlu1 %v1505_v7 }
 0x635   : > { %1385 = vmax.xlane.f32.xlu0 %v1384_v8 }
 0x639   : > { %1503 = vmax.xlane.f32.xlu0 %v1502_v9 }
 0x6ba   : > { %v1261_v10 = vpop.xlane.xlu0 %1260 }
 0x6bb   : > { %v1265_v22 = vsub.f32 %v1252_v59, %v1261_v10  ;;  %v2893_v10 = vld [vmem:[%s3910_s20] sm:$0xff]  }
 0x6bc   : > { %v1264_v12 = vpop.xlane.xlu1 %1263  ;;  %2660 = vmatpush3.bf16.msra.mxu0 %v2893_v10  ;;  %v2909_v10 = vld [vmem:[%s3916_s14 + $0x24] ss:$8 sps:$4 sm:$0xff]  }
 0x6bd   : > { %v1266_v23 = vsub.f32 %v1255_v0, %v1264_v12  ;;  %v1267_v28 = vmul.f32 1.442695, %v1265_v22  ;;  %v2894_v12 = vld [vmem:[%s3910_s20 + $0x8] sm:$0xff]   ;;  %2661 = vmatprep.subr.bf16.mxu0 %v3372_v16 }
 0x6be   : > { %v1383_v13 = vpop.xlane.xlu0 %1382 }
 0x6bf   : > { %v1387_v14 = vsub.f32 %v1374_v53, %v1383_v13  ;;  %v1269_v29 = vmul.f32 1.442695, %v1266_v23  ;;  %v2895_v13 = vld [vmem:[%s3910_s20 + $0x10] sm:$0xff]  }
 0x6c0   : > { %v1507_v17 = vpop.xlane.xlu1 %1506  ;;  %2662 = vmatpush3.bf16.msra.mxu0 %v2894_v12  ;;  %v2899_v23 = vld [vmem:[%s3910_s20 + $0x30] sm:$0xff]   ;;  %v2907_v12 = vld [vmem:[%s3916_s14 + $0x20] ss:$8 sps:$4 sm:$0xff]  }
 0x6c1   : > { %v1389_v18 = vmul.f32 1.442695, %v1387_v14  ;;  %v1509_v19 = vsub.f32 %v1498_v2, %v1507_v17  ;;  %2663 = vmatprep.subr.bf16.mxu0 %v3372_v16  ;;  %v2896_v14 = vld [vmem:[%s3910_s20 + $0x18] sm:$0xff]   ;;  %v2897_v17 = vld [vmem:[%s3910_s20 + $0x20] sm:$0xff]  }
 0x6c2   : > { %v1386_v20 = vpop.xlane.xlu0 %1385 }
 0x6c3   : > { %2949 = vpow2.f32 %v1389_v18  ;;  %v1388_v21 = vsub.f32 %v1377_v57, %v1386_v20  ;;  %v1512_v24 = vmul.f32 1.442695, %v1509_v19  ;;  %v2898_v19 = vld [vmem:[%s3910_s20 + $0x28] sm:$0xff]  }
 0x6c4   : > { %2664 = vmatpush3.bf16.msra.mxu0 %v2895_v13  ;;  %v2912_v13 = vld [vmem:[%s3916_s14 + $0x34] ss:$8 sps:$4 sm:$0xff]  }
 0x6c5   : > { %v1391_v25 = vmul.f32 1.442695, %v1388_v21  ;;  %2665 = vmatprep.subr.bf16.mxu0 %v3372_v16 }
 0x6c6   : > { %v1504_v26 = vpop.xlane.xlu0 %1503 }
 0x6c7   : > { %2951 = vpow2.f32 %v1391_v25  ;;  %v1508_v27 = vsub.f32 %v1495_v61, %v1504_v26  ;;  %v2900_v26 = vld [vmem:[%s3910_s20 + $0x38] sm:$0xff]  }
 0x6c8   : > { %2953 = vpow2.f32 %v1512_v24  ;;  %2666 = vmatpush3.bf16.msra.mxu0 %v2896_v14  ;;  %v2910_v14 = vld [vmem:[%s3916_s14 + $0x30] ss:$8 sps:$4 sm:$0xff]  }
 0x6c9   : > { %v1510_v30 = vmul.f32 1.442695, %v1508_v27  ;;  %2667 = vmatprep.subr.bf16.mxu0 %v3372_v16 }
 0x6cb   : > { %2955 = vpow2.f32 %v1510_v30 }
 0x6cc   : > { %2957 = vpow2.f32 %v1267_v28  ;;  %2668 = vmatpush3.bf16.msra.mxu0 %v2897_v17  ;;  %v2915_v17 = vld [vmem:[%s3916_s14 + $0x44] ss:$8 sps:$4 sm:$0xff]  }
 0x6cd   : > { %v2950_v31 = vpop.eup %2949  ;;  %2959 = vpow2.f32 %v1269_v29  ;;  %2669 = vmatprep.subr.bf16.mxu0 %v3372_v16 }
 0x6ce   : > { %v1393_v32 = vsel %vm1138_vm4, %v2950_v31, 0.0 }
 0x6cf   : > { %1394 = vadd.xlane.f32.xlu0 %v1393_v32 }
 0x6d0   : > { %2670 = vmatpush3.bf16.msra.mxu0 %v2898_v19  ;;  %v2916_v19 = vld [vmem:[%s3916_s14 + $0x50] ss:$8 sps:$4 sm:$0xff]  }
 0x6d1   : > { %v2952_v35 = vpop.eup %2951  ;;  %2671 = vmatprep.subr.bf16.mxu0 %v3372_v16 }
 0x6d2   : > { %v1396_v36 = vsel %vm1138_vm4, %v2952_v35, 0.0  ;;  %v2954_v37 = vpop.eup %2953 }
 0x6d3   : > { %1397 = vadd.xlane.f32.xlu1 %v1396_v36  ;;  %v1517_v41 = vsel %vm1138_vm4, %v2954_v37, 0.0 }
 0x6d4   : > { %2672 = vmatpush3.bf16.msra.mxu0 %v2899_v23  ;;  %v2922_v23 = vld [vmem:[%s3916_s14 + $0x70] ss:$8 sps:$4 sm:$0xff]  }
 0x6d5   : > { %v2956_v38 = vpop.eup %2955  ;;  %2673 = vmatprep.subr.bf16.mxu0 %v3372_v16 }
 0x6d6   : > { %v2958_v39 = vpop.eup %2957  ;;  %v1514_v40 = vsel %vm1138_vm4, %v2956_v38, 0.0 }
 0x6d7   : > { %v2960_v42 = vpop.eup %2959  ;;  %1515 = vadd.xlane.f32.xlu0 %v1514_v40  ;;  %1518 = vadd.xlane.f32.xlu1 %v1517_v41  ;;  %v1271_v43 = vsel %vm1138_vm4, %v2958_v39, 0.0 }
 0x6d8   : > { %v1274_v44 = vsel %vm1138_vm4, %v2960_v42, 0.0  ;;  %2674 = vmatpush3.bf16.msra.mxu0 %v2900_v26  ;;  %v2927_v26 = vld [vmem:[%s3918_s22 + $0x48] sm:$0xff]  }
 0x6db   : > { %1272 = vadd.xlane.f32.xlu0 %v1271_v43  ;;  %1275 = vadd.xlane.f32.xlu1 %v1274_v44 }
 0x6ec   : > { %1404 = vrot.lane.b32.xlu1 %v4019_v11, %s3376_s24 }
 0x6f0   : > { %1525 = vrot.lane.b32.xlu1 %v4019_v11, %s3375_s18 }
 0x6f1   : > { %1283 = vrot.lane.b32.xlu0 %v4019_v11, %s3374_s7 }
 0x75c   : > { %v1395_v45 = vpop.xlane.xlu0 %1394 }
 0x760   : > { %v1398_v46 = vpop.xlane.xlu1 %1397 }
 0x764   : > { %v1516_v47 = vpop.xlane.xlu0 %1515  ;;  %v1519_v52 = vpop.xlane.xlu1 %1518 }
 0x768   : > { %v1273_v53 = vpop.xlane.xlu0 %1272  ;;  %v1276_v55 = vpop.xlane.xlu1 %1275 }
 0x769   : > { %2961 = vrcp.f32 %v1273_v53 }
 0x76a   : > { %2963 = vrcp.f32 %v1276_v55 }
 0x76b   : > { %2965 = vrcp.f32 %v1398_v46 }
 0x76c   : > { %v1284_v56 = vpop.permute.xlu0 %1283  ;;  %2967 = vrcp.f32 %v1395_v45  ;;  %v1405_v62 = vpop.permute.xlu1 %1404 }
 0x76d   : > { %2630 = vmatpush3.bf16.msra.mxu1 %v1284_v56  ;;  %2969 = vrcp.f32 %v1516_v47 }
 0x76e   : > { %2641 = vmatprep.subr.bf16.mxu1 %v3372_v16  ;;  %2971 = vrcp.f32 %v1519_v52 }
 0x770   : > { %v1526_v6 = vpop.permute.xlu1 %1525 }
 0x773   : > { %v2962_v57 = vpop.eup %2961 }
 0x774   : > { %v2964_v58 = vpop.eup %2963  ;;  %v1279_v59 = vmul.f32 %v2962_v57, %v2958_v39  ;;  %v1624_v57 = vrot.slane %v4015_v3, %v4005_v51 }
 0x775   : > { %v1280_v60 = vmul.f32 %v2964_v58, %v2960_v42  ;;  %v2966_v61 = vpop.eup %2965 }
 0x776   : > { %v2968_v63 = vpop.eup %2967  ;;  %v1402_v0 = vmul.f32 %v2966_v61, %v2952_v35 }
 0x777   : > { %v1281_v11 = vpack.c.bf16 %v1280_v60, %v1279_v59  ;;  %v1401_v1 = vmul.f32 %v2968_v63, %v2950_v31  ;;  %v2970_v2 = vpop.eup %2969  ;;  %v2901_v63 = vld [vmem:[%s3916_s14] ss:$8 sps:$4 sm:$0xff]  }
 0x778   : > { %v2972_v5 = vpop.eup %2971  ;;  %v1522_v7 = vmul.f32 %v2970_v2, %v2956_v38  ;;  %v2904_v2 = vld [vmem:[%s3916_s14 + $0x10] ss:$8 sps:$4 sm:$0xff]  }
 0x779   : > { %2632 = vmatmul.mubr.msk.bf16.vlgmr.msra.gmra.mrb[16].mxu1 %vm1138_vm4, %v1281_v11  ;;  %v1403_v4 = vpack.c.bf16 %v1402_v0, %v1401_v1  ;;  %v1523_v8 = vmul.f32 %v2972_v5, %v2954_v37  ;;  %v2903_v0 = vld [vmem:[%s3916_s14 + $0x4] ss:$8 sps:$4 sm:$0xff]   ;;  %v2906_v1 = vld [vmem:[%s3916_s14 + $0x14] ss:$8 sps:$4 sm:$0xff]  }
 0x77a   : > { %2642 = vmatpush3.bf16.msra.mxu1 %v1405_v62  ;;  %2643 = vmatprep.mubr.msk.bf16.mxu1 %vm3373_vm2, %v3372_v16 }
 0x77b   : > { %2653 = vmatprep.subr.bf16.mxu1 %v3372_v16  ;;  %v1524_v9 = vpack.c.bf16 %v1523_v8, %v1522_v7 }
 0x781   : > { %2644 = vmatmul.mubr.msk.bf16.vlgmr.msra.gmra.mrb[20].mxu1 %vm1138_vm4, %v1403_v4 }
 0x782   : > { %2654 = vmatpush3.bf16.msra.mxu1 %v1526_v6  ;;  %2655 = vmatprep.mubr.msk.bf16.mxu1 %vm3373_vm2, %v3372_v16 }
 0x783   : > { %1860 = vmatprep.subr.bf16.mxu1 %v2903_v0 }
 0x789   : > { %2656 = vmatmul.mubr.msk.bf16.vlgmr.msra.gmra.mrb[24].mxu1 %vm1138_vm4, %v1524_v9 }
 0x78a   : > { %1892 = vmatprep.mubr.bf16.mxu1 %v3371_v15  ;;  %1861 = vmatpush1.bf16.msra.mxu1 %v2901_v63 }
 0x78b   : > { %1862 = vmatprep.subr.bf16.mxu1 %v2906_v1 }
 0x78e   : > { %1863 = vmatpush1.bf16.msra.mxu1 %v2904_v2 }
 0x78f   : > { %1864 = vmatprep.subr.bf16.mxu1 %v2909_v10 }
 0x792   : > { %1865 = vmatpush1.bf16.msra.mxu1 %v2907_v12 }
 0x793   : > { %1866 = vmatprep.subr.bf16.mxu1 %v2912_v13 }
 0x796   : > { %1867 = vmatpush1.bf16.msra.mxu1 %v2910_v14 }
 0x797   : > { %1868 = vmatprep.subr.bf16.mxu1 %v2915_v17 }
 0x84c   : > { %v1323_v15 = vpop.f32.mrb[16].mxu1 }
 0x84d   : > { %v2633_v18 = vpop.f32.mrb[17].mxu1 }
 0x84e   : > { %v1326_v20 = vpop.f32.mrb[18].mxu1  ;;  %v2918_v18 = vld [vmem:[%s3916_s14 + $0x54] ss:$8 sps:$4 sm:$0xff]  }
 0x84f   : > { %v2846_v21 = vpack.i.bf16 %v1326_v20, %v1323_v15  ;;  %v2634_v22 = vpop.f32.mrb[19].mxu1  ;;  %v2913_v15 = vld [vmem:[%s3916_s14 + $0x40] ss:$8 sps:$4 sm:$0xff]   ;;  %v2921_v20 = vld [vmem:[%s3916_s14 + $0x64] ss:$8 sps:$4 sm:$0xff]  }
 0x850   : > { %1869 = vmatpush1.bf16.msra.mxu1 %v2913_v15  ;;  %v2924_v22 = vld [vmem:[%s3916_s14 + $0x74] ss:$8 sps:$4 sm:$0xff]  }
 0x851   : > { %2847 = vrot.lane.b32.xlu1 %v2846_v21, %s3375_s18  ;;  %1870 = vmatprep.subr.bf16.mxu1 %v2918_v18  ;;  %v2919_v21 = vld [vmem:[%s3916_s14 + $0x60] ss:$8 sps:$4 sm:$0xff]  }
 0x854   : > { %v1444_v24 = vpop.f32.mrb[20].mxu1  ;;  %1871 = vmatpush1.bf16.msra.mxu1 %v2916_v19 }
 0x855   : > { %v2645_v25 = vpop.f32.mrb[21].mxu1  ;;  %1872 = vmatprep.subr.bf16.mxu1 %v2921_v20 }
 0x856   : > { %v1447_v27 = vpop.f32.mrb[22].mxu1  ;;  %v2926_v25 = vld [vmem:[%s3918_s22] sm:$0xff]  }
 0x857   : > { %v2851_v28 = vpack.i.bf16 %v1447_v27, %v1444_v24  ;;  %v2646_v29 = vpop.f32.mrb[23].mxu1  ;;  %v2925_v24 = vld [vmem:[%s3918_s22 + $0x40] sm:$0xff]   ;;  %v2928_v27 = vld [vmem:[%s3918_s22 + $0x8] sm:$0xff]  }
 0x858   : > { %1873 = vmatpush1.bf16.msra.mxu1 %v2919_v21  ;;  %2557 = vmatprep.subr.bf16.mxu0 %v2925_v24  ;;  %v2930_v29 = vld [vmem:[%s3918_s22 + $0x10] sm:$0xff]  }
 0x859   : > { %2852 = vrot.lane.b32.xlu0 %v2851_v28, %s3376_s24  ;;  %1874 = vmatprep.subr.bf16.mxu1 %v2924_v22  ;;  %v2929_v28 = vld [vmem:[%s3918_s22 + $0x50] sm:$0xff]  }
 0x85c   : > { %v1565_v30 = vpop.f32.mrb[24].mxu1  ;;  %1875 = vmatpush1.bf16.msra.mxu1 %v2922_v23 }
 0x85d   : > { %v2657_v31 = vpop.f32.mrb[25].mxu1 }
 0x85e   : > { %v1568_v32 = vpop.f32.mrb[26].mxu1  ;;  %v2932_v31 = vld [vmem:[%s3918_s22 + $0x18] sm:$0xff]  }
 0x85f   : > { %v2856_v35 = vpack.i.bf16 %v1568_v32, %v1565_v30  ;;  %v2658_v36 = vpop.f32.mrb[27].mxu1  ;;  %v2931_v30 = vld [vmem:[%s3918_s22 + $0x58] sm:$0xff]   ;;  %v2933_v32 = vld [vmem:[%s3918_s22 + $0x60] sm:$0xff]  }
 0x860   : > { %v2935_v36 = vld [vmem:[%s3918_s22 + $0x68] sm:$0xff]  }
 0x861   : > { %2857 = vrot.lane.b32.xlu1 %v2856_v35, %s3374_s7  ;;  %v2934_v35 = vld [vmem:[%s3918_s22 + $0x20] sm:$0xff]  }
 0x8c3   : > { %v2848_v37 = vpop.permute.xlu1 %2847 }
 0x8c4   : > { %v2850_v39 = vunpack.i.h.bf16 %v2848_v37  ;;  %v2849_v40 = vunpack.i.l.bf16 %v2848_v37 }
 0x8c6   : > { %v1597_v43 = vsel %vm1090_vm3, %v4053_v54, %v2850_v39  ;;  %v1596_v44 = vsel %vm1090_vm3, %v4051_v50, %v2849_v40 }
 0x8cb   : > { %v2853_v38 = vpop.permute.xlu0 %2852 }
 0x8cc   : > { %v2855_v16 = vunpack.i.h.bf16 %v2853_v38  ;;  %v2854_v41 = vunpack.i.l.bf16 %v2853_v38 }
 0x8ce   : > { %v1600_v47 = vsel %vm1598_vm5, %v1597_v43, %v2855_v16  ;;  %v1599_v52 = vsel %vm1598_vm5, %v1596_v44, %v2854_v41 }
 0x8d3   : > { %v2858_v42 = vpop.permute.xlu1 %2857 }
 0x8d4   : > { %v2860_v45 = vunpack.i.h.bf16 %v2858_v42  ;;  %v2859_v46 = vunpack.i.l.bf16 %v2858_v42  ;;  %v1741_v42 = vsub.s32 2, %v3998_v48 }
 0x8d6   : > { %v1603_v53 = vsel %vm1601_vm6, %v1600_v47, %v2860_v45  ;;  %v1602_v55 = vsel %vm1601_vm6, %v1599_v52, %v2859_v46  ;;  %v1742_v45 = vrot.slane %v4015_v3, %v1741_v42  ;;  %v1747_v46 = vsub.s32 3, %v3998_v48 }
 0x8d7   : > { %v1604_v56 = vpack.c.bf16 %v1603_v53, %v1602_v55  ;;  %v2114_v42 = vsub.s32 6, %v3998_v48 }
 0x8d8   : > { %v1748_v55 = vrot.slane %v4015_v3, %v1747_v46 }
 0x8d9   : > { %2676 = vmatmul.mubr.bf16.vlgmr.msra.gmra.mrb[12].mxu0 %v1604_v56 }
 0x8da   : > { %2558 = vmatpush3.bf16.msra.mxu0 %v2926_v25 }
 0x8db   : > { %2559 = vmatprep.subr.bf16.mxu0 %v2927_v26 }
 0x8de   : > { %2560 = vmatpush3.bf16.msra.mxu0 %v2928_v27 }
 0x8df   : > { %2561 = vmatprep.subr.bf16.mxu0 %v2929_v28 }
 0x8e2   : > { %2562 = vmatpush3.bf16.msra.mxu0 %v2930_v29 }
 0x8e3   : > { %2563 = vmatprep.subr.bf16.mxu0 %v2931_v30 }
 0x8e6   : > { %2564 = vmatpush3.bf16.msra.mxu0 %v2932_v31 }
 0x8e7   : > { %2565 = vmatprep.subr.bf16.mxu0 %v2933_v32 }
 0x8ea   : > { %2566 = vmatpush3.bf16.msra.mxu0 %v2934_v35 }
 0x8eb   : > { %2567 = vmatprep.subr.bf16.mxu0 %v2935_v36 }
 0x9ac   : > { %v1707_v58 = vpop.f32.mrb[12].mxu0 }
 0x9ad   : > { %v1708_v54 = vadd.f32 %v1707_v58, %v1624_v57  ;;  %v2677_v59 = vpop.f32.mrb[13].mxu0 }
 0x9ae   : > { %v1710_v60 = vpop.f32.mrb[14].mxu0  ;;  %v2936_v59 = vld [vmem:[%s3918_s22 + $0x28] sm:$0xff]  }
 0x9af   : > { %v1711_v50 = vadd.f32 %v1710_v60, %v1624_v57  ;;  %v2678_v11 = vpop.f32.mrb[15].mxu0  ;;  %v1714_v61 = vadd.f32 %v1708_v54, %v3971_v33  ;;  %2568 = vmatpush3.bf16.msra.mxu0 %v2936_v59  ;;  %v2937_v60 = vld [vmem:[%s3918_s22 + $0x70] sm:$0xff]  }
 0x9b0   : > { %2569 = vmatprep.subr.bf16.mxu0 %v2937_v60  ;;  %v2939_v11 = vld [vmem:[%s3918_s22 + $0x78] sm:$0xff]  }
 0x9b1   : > { %1716 = vadd.xlane.f32.xlu0 %v1714_v61  ;;  %v1715_v62 = vadd.f32 %v1711_v50, %v3973_v34  ;;  %v2938_v50 = vld [vmem:[%s3918_s22 + $0x30] sm:$0xff]  }
 0x9b3   : > { %1718 = vadd.xlane.f32.xlu1 %v1715_v62  ;;  %2570 = vmatpush3.bf16.msra.mxu0 %v2938_v50 }
 0x9b4   : > { %2571 = vmatprep.subr.bf16.mxu0 %v2939_v11 }
 0xa3e   : > { %v1717_v4 = vpop.xlane.xlu0 %1716 }
 0xa3f   : > { %v1721_v5 = vmul.f32 0.0078125, %v1717_v4 }
 0xa40   : > { %v1719_v6 = vpop.xlane.xlu1 %1718 }
 0xa41   : > { %v4113_v33 = vsub.f32 %v1714_v61, %v1721_v5  ;;  %v1722_v34 = vmul.f32 0.0078125, %v1719_v6  ;;  %v2940_v61 = vld [vmem:[%s3918_s22 + $0x38] sm:$0xff]  }
 0xa42   : > { %2572 = vmatpush3.bf16.msra.mxu0 %v2940_v61 }
 0xa43   : > { %v4115_v7 = vsub.f32 %v1715_v62, %v1722_v34  ;;  %v1725_v8 = vmul.f32 %v4113_v33, %v4113_v33  ;;  %v1768_v62 = vld [vmem:[%s3935_s5] sm:$0x3]  ;;  %s4374_s5 = sld [smem:[#allocation27_spill]] }
 0xa44   : > { %v1773_v63 = vrot.slane %v1768_v62, %v4001_v49  ;;  %v1777_v0 = vrot.slane %v1768_v62, %v4005_v51  ;;  %v1943_v49 = vsub.s32 4, %v3998_v48 }
 0xa45   : > { %1727 = vadd.xlane.f32.xlu0 %v1725_v8  ;;  %v1726_v9 = vmul.f32 %v4115_v7, %v4115_v7 }
 0xa46   : > { %v1944_v51 = vrot.slane %v4015_v3, %v1943_v49 }
 0xa49   : > { %1729 = vadd.xlane.f32.xlu0 %v1726_v9  ;;  %p2505_p0 = scmp.ne.s32.totalorder %s4374_s5, 1 }
 0xad2   : > { %v1728_v37 = vpop.xlane.xlu0 %1727 }
 0xad3   : > { %v1731_v38 = vmul.f32 0.0078125, %v1728_v37 }
 0xad5   : > { %v1733_v39 = vadd.f32 1e-05, %v1731_v38 }
 0xad6   : > { %v1730_v40 = vpop.xlane.xlu0 %1729 }
 0xad7   : > { %2973 = vrsqrt.f32 %v1733_v39  ;;  %v1732_v16 = vmul.f32 0.0078125, %v1730_v40 }
 0xad9   : > { %v1734_v41 = vadd.f32 1e-05, %v1732_v16 }
 0xadb   : > { %2975 = vrsqrt.f32 %v1734_v41  ;;  %v2108_v41 = vsub.s32 5, %v3998_v48 }
 0xae1   : > { %v2974_v43 = vpop.eup %2973 }
 0xae2   : > { %v1737_v44 = vmul.f32 %v2974_v43, %v4113_v33  ;;  %v2109_v43 = vrot.slane %v4015_v3, %v2108_v41 }
 0xae4   : > { %v1743_v53 = vmul.f32 %v1742_v45, %v1737_v44 }
 0xae5   : > { %v2976_v47 = vpop.eup %2975 }
 0xae6   : > { %v1738_v52 = vmul.f32 %v2976_v47, %v4115_v7  ;;  %v1749_v57 = vadd.f32 %v1748_v55, %v1743_v53 }
 0xae8   : > { %v1744_v56 = vmul.f32 %v1742_v45, %v1738_v52  ;;  %v2115_v45 = vrot.slane %v4015_v3, %v2114_v42 }
 0xaea   : > { %v1750_v58 = vadd.f32 %v1748_v55, %v1744_v56 }
 0xaec   : > { %v1751_v54 = vpack.c.bf16 %v1750_v58, %v1749_v57 }
 0xaee   : > { %1893 = vmatmul.mubr.bf16.vlgmr.msra.gmra.mrb[28].mxu1 %v1751_v54 }
 0xbc1   : > { %v1894_v1 = vpop.f32.mrb[28].mxu1 }
 0xbc2   : > { %v1895_v2 = vadd.f32 %v1894_v1, %v1773_v63  ;;  %v1896_v4 = vpop.f32.mrb[29].mxu1 }
 0xbc3   : > { %v1897_v5 = vadd.f32 %v1896_v4, %v1777_v0  ;;  %v1898_v6 = vpop.f32.mrb[30].mxu1 }
 0xbc4   : > { %v1899_v33 = vadd.f32 %v1898_v6, %v1773_v63  ;;  %v1900_v34 = vpop.f32.mrb[31].mxu1  ;;  %v1903_v8 = vmax.f32 %v1895_v2, 0.0 }
 0xbc5   : > { %v1901_v7 = vadd.f32 %v1900_v34, %v1777_v0  ;;  %v1904_v10 = vmax.f32 %v1897_v5, 0.0 }
 0xbc6   : > { %v1905_v9 = vmax.f32 %v1899_v33, 0.0 }
 0xbc7   : > { %v1906_v12 = vmax.f32 %v1901_v7, 0.0 }
 0xbc8   : > { %v1907_v13 = vpack.c.bf16 %v1905_v9, %v1903_v8 }
 0xbc9   : > { %v1908_v14 = vpack.c.bf16 %v1906_v12, %v1904_v10 }
 0xbcb   : > { %2073 = vmatprep.mubr.bf16.mxu0 %v1908_v14 }
 0xbcc   : > { %2074 = vmatmul.mubr.bf16.vlgmr.msra.gmra.mrb[16].mxu0 %v1907_v13 }
 0xc9f   : > { %v2573_v17 = vpop.f32.mrb[16].mxu0 }
 0xca0   : > { %v2574_v15 = vpop.f32.mrb[17].mxu0 }
 0xca1   : > { %v2575_v18 = vadd.f32 %v2574_v15, %v2573_v17  ;;  %v2576_v19 = vpop.f32.mrb[18].mxu0 }
 0xca2   : > { %v2577_v20 = vpop.f32.mrb[19].mxu0 }
 0xca3   : > { %v2076_v21 = vadd.f32 %v2575_v18, %v1944_v51  ;;  %v2578_v22 = vadd.f32 %v2577_v20, %v2576_v19 }
 0xca5   : > { %v2079_v23 = vadd.f32 %v2578_v22, %v1944_v51  ;;  %v2082_v24 = vadd.f32 %v2076_v21, %v1749_v57 }
 0xca7   : > { %2084 = vadd.xlane.f32.xlu0 %v2082_v24  ;;  %v2083_v25 = vadd.f32 %v2079_v23, %v1750_v58 }
 0xca9   : > { %2086 = vadd.xlane.f32.xlu1 %v2083_v25 }
 0xd34   : > { %v2085_v26 = vpop.xlane.xlu0 %2084 }
 0xd35   : > { %v2088_v27 = vmul.f32 0.0078125, %v2085_v26 }
 0xd36   : > { %v2087_v28 = vpop.xlane.xlu1 %2086 }
 0xd37   : > { %v2090_v29 = vsub.f32 %v2082_v24, %v2088_v27  ;;  %v2089_v30 = vmul.f32 0.0078125, %v2087_v28 }
 0xd39   : > { %v2091_v31 = vsub.f32 %v2083_v25, %v2089_v30  ;;  %v2092_v32 = vmul.f32 %v2090_v29, %v2090_v29 }
 0xd3b   : > { %2094 = vadd.xlane.f32.xlu0 %v2092_v32  ;;  %v2093_v35 = vmul.f32 %v2091_v31, %v2091_v31 }
 0xd3d   : > { %2096 = vadd.xlane.f32.xlu1 %v2093_v35 }
 0xdc8   : > { %v2095_v36 = vpop.xlane.xlu0 %2094 }
 0xdc9   : > { %v2098_v37 = vmul.f32 0.0078125, %v2095_v36 }
 0xdca   : > { %v2097_v38 = vpop.xlane.xlu1 %2096 }
 0xdcb   : > { %v2100_v39 = vadd.f32 1e-05, %v2098_v37  ;;  %v2099_v40 = vmul.f32 0.0078125, %v2097_v38 }
 0xdcd   : > { %2977 = vrsqrt.f32 %v2100_v39  ;;  %v2101_v16 = vadd.f32 1e-05, %v2099_v40 }
 0xdcf   : > { %2979 = vrsqrt.f32 %v2101_v16 }
 0xdd7   : > { %v2978_v44 = vpop.eup %2977 }
 0xdd8   : > { %v2104_v46 = vmul.f32 %v2978_v44, %v2090_v29 }
 0xdd9   : > { %v2980_v47 = vpop.eup %2979 }
 0xdda   : > { %v2110_v52 = vmul.f32 %v2109_v43, %v2104_v46  ;;  %v2105_v53 = vmul.f32 %v2980_v47, %v2091_v31  ;;  %2123 = sbr.rel (%p2505_p0) target bundleno = 3553 (0xde1), region = 108 }
 0xddc   : > { %v2116_v55 = vadd.f32 %v2115_v45, %v2110_v52  ;;  %v2111_v56 = vmul.f32 %v2109_v43, %v2105_v53 }
 0xdde   : > { %2118 = vst [vmem:[#allocation2] sm:$0xff] %v2116_v55  ;;  %v2117_v57 = vadd.f32 %v2115_v45, %v2111_v56  ;;  %2124 = vst [vmem:[%s3942_s15] sm:$0xff] (!%p2505_p0), %v2116_v55 }
 0xde0   : > { %2119 = vst [vmem:[#allocation2 + $0x8] sm:$0xff] %v2117_v57  ;;  %2125 = vst [vmem:[%s3942_s15 + $0x8] sm:$0xff] (!%p2505_p0), %v2117_v57 }
 0xde1 PF: > { %s4375_s21 = sld [smem:[#allocation28_spill]]  ;;  %s4376_s10 = sld [smem:[#allocation51_spill]] }
 0xde2   : > { %s2140_s4 = sshll.u32 %s3942_s15, 4  ;;  %s2127_s3 = scalar_lea.sflag [#allocation5], %s3886_s23  ;;  %s4174_s4 = int_to_ptr.vmem [resolvable:$true] %s2140_s4 }
 0xde3   : > { %s3217_s19 = scalar_lea.vmem %s4174_s4, 256  ;;  %p4377_p12 = scmp.ne.s32.totalorder %s4346_s29, 0 }
 0xde4   : > { %p3218_p13 = scmp.ne.s32.totalorder %s4174_s4, %s3217_s19  ;;  %s3377_s12 = smov [#allocation17]  }
 0xde5   : > { %s3221_s9 = sshll.u32 %s3377_s12, 4  ;;  %s3222_s9 = int_to_ptr.vmem [resolvable:$false] %s3221_s9 }
 0xde6   : > { %p3219_p7 = pnand %p3218_p13, %p4377_p12  ;;  %s3223_s17 = scalar_lea.vmem %s3222_s9, 512 }
 0xde7   : > { %s2517_s20 = sshll.u32 %s4375_s21, 8  ;;  %p3224_p6 = scmp.lt.s32.totalorder %s4174_s4, %s3222_s9 }
 0xde8   : > { %s4171_s16 = scalar_lea.hbm %s4376_s10, %s2517_s20  ;;  %p3220_p8 = pneg %p3219_p7 }
 0xde9   : > { %p3225_p3 = scmp.lt.s32.totalorder %s3223_s17, %s3217_s19 }
 0xdeb   : > { %p3226_p1 = por %p3225_p3, %p3224_p6 }
 0xded   : > { %p3227_p5 = pnand %p3226_p1, %p3220_p8 }
 0xdef   : > { %3230 = shalt.err (!%p3227_p5)
}
 0xdf0   : > { %s3231_s15 = scalar_lea.hbm %s4171_s16, 256  ;;  %s3235_s27 = scalar_lea.hbm %s4376_s10, 512 }
 0xdf1   : > { %p3232_p2 = scmp.ne.s32.totalorder %s4171_s16, %s3231_s15  ;;  %p3236_p9 = scmp.lt.u32.totalorder %s4171_s16, %s4376_s10 }
 0xdf2   : > { %p3237_p4 = scmp.lt.u32.totalorder %s3235_s27, %s3231_s15  ;;  %p3239_p13 = scmp.lt.u32.totalorder %s3231_s15, %s4171_s16 }
 0xdf3   : > { %p3233_p10 = pnand %p3232_p2, %p4377_p12 }
 0xdf4   : > { %p3238_p0 = por %p3237_p4, %p3236_p9 }
 0xdf5   : > { %p3234_p11 = pneg %p3233_p10 }
 0xdf6   : > { %p3240_p7 = por %p3239_p13, %p3238_p0 }
 0xdf8   : > { %p3241_p8 = pnand %p3240_p7, %p3234_p11 }
 0xdfa   : > { %3244 = shalt.err (!%p3241_p8)
}
 0xdfb   : > { %s3378_s2 = smov 128   ;;  %s3379_s0 = smov 8  }
 0xdfc   : > { %2699 = dma.vmem_to_hbm [thread:$0]  (%p4377_p12), %s4174_s4, 256, %s4171_s16, %s2127_s3, %s3378_s2, %s3378_s2, %s3379_s0  }
 0xdfd PF: > { %s4378_s7 = sld [smem:[#allocation26_spill]]  ;;  %s4379_s18 = sld [smem:[#allocation32_spill]] }
 0xdfe   : > { %p2736_p6 = scmp.ge.s32.totalorder %s3355_s13, 2 }
 0xe03   : > { %s2155_s24 = sand.u32 1, %s4378_s7   ;;  %p4380_p3 = scmp.ne.s32.totalorder %s4379_s18, 0 }
 0xe04   : > { %s2156_s5 = scalar_lea.sflag [#allocation5], %s2155_s24 }
 0xe05   : > { %p2728_p1 = pnand %p2736_p6, %p4380_p3 }
 0xe07   : > { %3310 = dma.done.wait (!%p2728_p1), %s2156_s5, 256  }
 0xe08   : > { %3312 = vsyncadd (!%p2728_p1), %s2156_s5, 4294967040  ;;  %s38_s13 = sadd.s32 1, %s3355_s13   ;;  %s4381_s21 = sld [smem:[#allocation24_spill]] }
 0xe09   : > { %p35_p5 = scmp.ge.s32.totalorder %s38_s13, 6   ;;  %s4382_s22 = sld [smem:[#allocation25_spill]] }
 0xe0a   : > { %s4383_s23 = sld [smem:[#allocation36_spill]]  ;;  %s4384_s27 = sld [smem:[#allocation29_spill]] }
 0xe0b   : > { %s4385_s29 = sld [smem:[#allocation34_spill]]  ;;  %s4386_s20 = sld [smem:[#allocation38_spill]] }
 0xe0c   : > { %s4387_s24 = smov %s3331_s25  ;;  %s4388_s25 = smov %s3335_s26 }
 0xe0d   : > { %s4389_s26 = smov %s3755_s1  ;;  %s4390_s28 = smov %s3351_s30 }
 0xe0e   :  { %37 = sbr.rel (!%p35_p5) target bundleno = 30 (0x1e), region = 199 }
 0xe11   : > { %s4391_s30 = smov %s4386_s20 }
 0xe15   :  { %2161 = vsyncpa [#allocation4], 1 }
 0xe16   :  { %2163 = vsyncpa [#allocation4 + $0x1], 1 }
 0xe17   :  { %2164 = vsyncpa [#allocation7], 1 }
 0xe18   :  { %2165 = vsyncpa [#allocation10], 1 }
 0xe19   :  { %2167 = vsyncpa [#allocation10 + $0x1], 1 }
 0xe1a   :  { %2168 = vsyncpa [#allocation13], 1 }
 0xe1b   :  { %2170 = vsyncpa [#allocation13 + $0x1], 1 }
 0xe1c   :  { %2171 = vsyncpa [#allocation16], 1 }
 0xe1d   :  { %2173 = vsyncpa [#allocation16 + $0x1], 1 }
 0xe1e   :  { %2174 = vsyncpa [#allocation5], 1 }
 0xe1f   :  { %2176 = vsyncpa [#allocation5 + $0x1], 1 }

</bundles_post_ra>
